<compile_context>
chip_gen: v6e
topology: v6e:2x2x1
jax: 0.10.0
libtpu: 0.0.40
codegen_flags: <defaults>
</compile_context>

<pallas_src>
import functools

import numpy as np
import jax
import jax.numpy as jnp
from jax import lax
from jax.experimental import pallas as pl
from jax.experimental.pallas import tpu as pltpu

_PADDING = 1  # reference verify() compares against F.conv2d(..., padding=1)

# A^T rows of the F(2x2, 3x3) output transform (entries are 0 / +1 / -1).
_A_T = ((1.0, 1.0, 1.0, 0.0), (0.0, 1.0, -1.0, -1.0))
# Filter transform G.
_G = np.array([[1.0, 0.0, 0.0],
               [0.5, 0.5, 0.5],
               [0.5, -0.5, 0.5],
               [0.0, 0.0, 1.0]], dtype=np.float32)


def _round_up(x, m):
    return ((x + m - 1) // m) * m


def _winograd_mm_kernel(u_ref, v_ref, y_ref, z_ref, *, tc, precision):
    """One (p, k) output tile, accumulating over the C reduction axis.

    u_ref: (8, tk, 3*tc)   pre-signed filter slabs, q = 2*i + b
    v_ref: (4, 4*tc, tp)   input slabs for this C tile: per i, the 4 j-slabs
    y_ref: (4, tk, tp)     2x2 output slabs (resident across the c axis)
    z_ref: (8, tk, tp) f32 accumulators  Z[2i+b] = sum_j A_T[b,j] * U[i,j] @ V[i,j]
    """
    c_idx = pl.program_id(2)

    @pl.when(c_idx == 0)
    def _init():
        z_ref[...] = jnp.zeros_like(z_ref)

    # 8 fused accumulate-dots: each result drains directly into its own
    # accumulator slab (single RMW per dot, no intermediate temporaries).
    for i in range(4):
        for b in range(2):
            q = 2 * i + b
            v_slab = v_ref[i, b * tc:(b + 3) * tc, :]          # (3*tc, tp)
            z_ref[q] += jnp.dot(u_ref[q], v_slab,
                                precision=precision,
                                preferred_element_type=jnp.float32)

    @pl.when(c_idx == pl.num_programs(2) - 1)
    def _finalize():
        # i-direction A^T:  Y[a, b] = sum_i A_T[a, i] * Z[2i + b]
        # A_T = [[1, 1, 1, 0], [0, 1, -1, -1]];   output slab index = 2*a + b.
        y_ref[0] = (z_ref[0] + z_ref[2] + z_ref[4]).astype(y_ref.dtype)
        y_ref[1] = (z_ref[1] + z_ref[3] + z_ref[5]).astype(y_ref.dtype)
        y_ref[2] = (z_ref[2] - z_ref[4] - z_ref[6]).astype(y_ref.dtype)
        y_ref[3] = (z_ref[3] - z_ref[5] - z_ref[7]).astype(y_ref.dtype)


def _vmem_capacity_bytes():
    # Generation-aware budget (v5e/v6e: 128 MiB, v7x: 64 MiB per TensorCore).
    try:
        return int(pltpu.get_tpu_info().vmem_capacity_bytes)
    except Exception:
        return 64 * 1024 * 1024  # conservative fallback (v7x)


def _block_bytes(tk, tc, tp, esz):
    u = 8 * tk * (3 * tc) * esz
    v = 16 * tc * tp * esz
    y = 4 * tk * tp * 4
    z = 8 * tk * tp * 4
    return 2 * (u + v + y) + z  # double-buffered in/out blocks + accumulator


def wconv_3x3(x, weight, *, compute_dtype=jnp.bfloat16):
    """Winograd F(2x2,3x3) conv, padding=1, stride=1.

    compute_dtype: dtype of the U/V operands fed to the MXU (accumulation is
    always f32).  bfloat16 halves HBM/VMEM traffic; pass jnp.float32 for a
    numerically tight result (accuracy-sensitive layers).
    """
    N, C, H0, W0 = x.shape
    K = weight.shape[0]
    m, r = 2, 3
    a = m + r - 1  # 4

    # Odd H/W: zero-pad to even and crop the output.  Rows/cols < H0/W0 of a
    # padding=1 conv only ever see the appended zero row/col as zero padding,
    # so the crop is exact.
    H, W = H0, W0
    if H % m:
        x = jnp.pad(x, ((0, 0), (0, 0), (0, 1), (0, 0)))
        H += 1
    if W % m:
        x = jnp.pad(x, ((0, 0), (0, 0), (0, 0), (0, 1)))
        W += 1
    Ht, Wt = H // m, W // m
    P = N * Ht * Wt

    esz = jnp.dtype(compute_dtype).itemsize  # 2 (bf16) or 4 (f32)

    # ---- dtype- and generation-aware tiling ---------------------------------
    vmem_cap = _vmem_capacity_bytes()
    big_vmem = vmem_cap >= 100 * 1024 * 1024           # v5e / v6e
    budget = (80 if big_vmem else 40) * 1024 * 1024     # double-buffered blocks
    vmem_limit = (100 if big_vmem else 48) * 1024 * 1024

    # K (output sublane axis): large tk avoids V HBM re-reads across K tiles.
    if K <= 256:
        tk = _round_up(K, 16)
    elif big_vmem and K >= 512:
        tk = 512
    else:
        tk = 256
    K_pad = _round_up(K, tk)

    # C (contraction): keep the whole contraction in one block when it fits;
    # otherwise split with a 128-multiple tile so the kernel's sublane slices
    # stay tile-aligned.  f32 operands (2x bytes) get half the tile.
    cmult = 16 if esz == 2 else 8
    tc_cap = 512 if esz == 2 else 256
    if _round_up(C, cmult) <= tc_cap:
        tc = _round_up(C, cmult)
        C_pad = tc
    else:
        tc = tc_cap
        C_pad = _round_up(C, tc)

    # P (lane axis): lane-dense tiles, bigger on 128 MiB parts.
    tp_cap = 1024 if (big_vmem and tk <= 256) else 512
    tp = min(_round_up(P, 128), tp_cap)
    while _block_bytes(tk, tc, tp, esz) > budget and tp > 128:
        tp = _round_up(tp // 2, 128)
    P_pad = _round_up(P, tp)

    # Megacore: guarantee >= 2 parallel tiles when the problem allows it
    # (v7x has 2 TensorCores; a length-1 parallel grid idles one of them).
    if (P_pad // tp) * (K_pad // tk) < 2:
        if P >= 2 * 128:
            tp = _round_up((P + 1) // 2, 128)
            P_pad = 2 * tp
        elif K_pad >= 32:
            tk = _round_up(K_pad // 2, 16)
            K_pad = 2 * tk

    n_ct = C_pad // tc
    f32 = jnp.float32

    # ---- filter transform + A^T(row b) pre-signing / slab packing (glue) ----
    gt = jnp.asarray(_G)
    U = jnp.einsum('ix,kcxy,jy->ijkc', gt, weight.astype(f32), gt,
                   precision=lax.Precision.HIGHEST)            # (4, 4, K, C)
    U = jnp.pad(U, ((0, 0), (0, 0), (0, K_pad - K), (0, C_pad - C)))
    u_slabs = []
    for i in range(a):
        for b in range(2):
            segs = []
            for ct in range(n_ct):
                lo, hi = ct * tc, (ct + 1) * tc
                for jj in range(3):
                    j = b + jj
                    segs.append(_A_T[b][j] * U[i, j, :, lo:hi])
            u_slabs.append(jnp.concatenate(segs, axis=-1))      # (K_pad, 3*C_pad)
    Up = jnp.stack(u_slabs, axis=0).astype(compute_dtype)        # (8, K_pad, 3*C_pad)

    # ---- patch extraction (strided slices, no gather) + B^T d B (+/-1 sums) --
    xp = jnp.pad(x.astype(f32),
                 ((0, 0), (0, 0), (_PADDING, _PADDING), (_PADDING, _PADDING)))
    xt = jnp.transpose(xp, (1, 0, 2, 3))                         # (C, N, H+2, W+2)
    d = [[lax.slice(xt, (0, 0, i, j),
                    (C, N, i + m * (Ht - 1) + 1, j + m * (Wt - 1) + 1),
                    (1, 1, m, m)).reshape(C, P)
          for j in range(a)] for i in range(a)]
    # t[a_][j] = sum_i B_T[a_, i] * d[i][j]
    t = [[None] * a for _ in range(a)]
    for j in range(a):
        t[0][j] = d[0][j] - d[2][j]
        t[1][j] = d[1][j] + d[2][j]
        t[2][j] = d[2][j] - d[1][j]
        t[3][j] = d[1][j] - d[3][j]
    # V[a_][b_] = sum_j B_T[b_, j] * t[a_][j]
    V = [[None] * a for _ in range(a)]
    for i in range(a):
        V[i][0] = t[i][0] - t[i][2]
        V[i][1] = t[i][1] + t[i][2]
        V[i][2] = t[i][2] - t[i][1]
        V[i][3] = t[i][1] - t[i][3]

    def _prep(v):  # (C, P) f32 -> (C_pad, P_pad) compute_dtype
        return jnp.pad(v.astype(compute_dtype),
                       ((0, C_pad - C), (0, P_pad - P)))

    v_slabs = []
    for i in range(a):
        pv = [_prep(V[i][j]) for j in range(a)]
        rows = []
        for ct in range(n_ct):
            lo, hi = ct * tc, (ct + 1) * tc
            for j in range(a):
                rows.append(pv[j][lo:hi])
        v_slabs.append(jnp.concatenate(rows, axis=0))            # (4*C_pad, P_pad)
    Vp = jnp.stack(v_slabs, axis=0)                               # (4, 4*C_pad, P_pad)

    # ---- hot path: 8 fused accumulate-dots per grid step ---------------------
    grid = (P_pad // tp, K_pad // tk, C_pad // tc)
    kernel = functools.partial(
        _winograd_mm_kernel, tc=tc,
        precision=(lax.Precision.HIGHEST if esz == 4 else None))
    y = pl.pallas_call(
        kernel,
        out_shape=jax.ShapeDtypeStruct((m * m, K_pad, P_pad), jnp.float32),
        grid_spec=pltpu.PrefetchScalarGridSpec(
            num_scalar_prefetch=0,
            grid=grid,
            in_specs=[
                pl.BlockSpec((2 * a, tk, 3 * tc), lambda p, k, c: (0, k, c)),
                pl.BlockSpec((a, 4 * tc, tp), lambda p, k, c: (0, c, p)),
            ],
            out_specs=pl.BlockSpec((m * m, tk, tp), lambda p, k, c: (0, k, p)),
            scratch_shapes=[pltpu.VMEM((2 * a, tk, tp), jnp.float32)],
        ),
        compiler_params=pltpu.CompilerParams(
            dimension_semantics=("parallel", "parallel", "arbitrary"),
            vmem_limit_bytes=vmem_limit,
        ),
    )(Up, Vp)

    # ---- scatter per-tile 2x2 outputs back to (N, K, H, W) (glue) ------------
    y = y[:, :K, :P]
    y = y.reshape(m, m, K, N, Ht, Wt)          # (a_off, b_off, K, N, Ht, Wt)
    y = y.transpose(3, 2, 4, 0, 5, 1)          # (N, K, Ht, a_off, Wt, b_off)
    y = y.reshape(N, K, H, W)
    return y[:, :, :H0, :W0]


if __name__ == "__main__":
    key = jax.random.PRNGKey(0)
    kx, kw = jax.random.split(key)

    def ref_conv(xx, ww):
        return lax.conv_general_dilated(
            xx, ww, window_strides=(1, 1), padding=((1, 1), (1, 1)),
            dimension_numbers=('NCHW', 'OIHW', 'NCHW'),
            precision=lax.Precision.HIGHEST)

    # Small even-sized test (same shapes as the reference module implies).
    N, C, H, W, K = 2, 4, 16, 16, 8
    x = jax.random.normal(kx, (N, C, H, W), dtype=jnp.float32)
    w = jax.random.normal(kw, (K, C, 3, 3), dtype=jnp.float32)
    ref = np.asarray(jax.block_until_ready(ref_conv(x, w)))

    # f32-operand path: tight check.
    out_f32 = jax.block_until_ready(wconv_3x3(x, w, compute_dtype=jnp.float32))
    assert out_f32.shape == (N, K, H, W)
    np.testing.assert_allclose(np.asarray(out_f32), ref, rtol=1e-4, atol=1e-3)

    # Default bf16-operand path (f32 accumulation): loose tolerance.
    out_bf16 = jax.block_until_ready(wconv_3x3(x, w))
    assert out_bf16.shape == (N, K, H, W)
    np.testing.assert_allclose(np.asarray(out_bf16), ref, rtol=5e-2, atol=5e-1)

    # Odd spatial size (pad-to-even + crop path), f32 operands.
    x_odd = jax.random.normal(kx, (1, 3, 9, 11), dtype=jnp.float32)
    w_odd = jax.random.normal(kw, (5, 3, 3, 3), dtype=jnp.float32)
    ref_odd = np.asarray(jax.block_until_ready(ref_conv(x_odd, w_odd)))
    out_odd = jax.block_until_ready(
        wconv_3x3(x_odd, w_odd, compute_dtype=jnp.float32))
    assert out_odd.shape == (1, 5, 9, 11)
    np.testing.assert_allclose(np.asarray(out_odd), ref_odd, rtol=1e-4, atol=1e-3)

    print("KERNEL_OK")
</pallas_src>

<mosaic_0001>
module attributes {stable_mosaic.version = 11 : i64} {
  func.func @_winograd_mm_kernel(%arg0: i32, %arg1: i32, %arg2: i32, %arg3: memref<8x16x24xf32, #tpu.memory_space<vmem>>, %arg4: memref<4x32x128xf32, #tpu.memory_space<vmem>>, %arg5: memref<4x16x128xf32, #tpu.memory_space<vmem>>, %arg6: memref<8x16x128xf32, #tpu.memory_space<vmem>>) attributes {dimension_semantics = [#tpu.dimension_semantics<parallel>, #tpu.dimension_semantics<parallel>, #tpu.dimension_semantics<arbitrary>], iteration_bounds = array<i64: 1, 1, 1>, scalar_prefetch = 0 : i64, scratch_operands = 1 : i64, tpu.core_type = #tpu.core_type<tc>, window_params = [{transform_indices = @transform_0, window_bounds = array<i64: 8, 16, 24>}, {transform_indices = @transform_1, window_bounds = array<i64: 4, 32, 128>}, {transform_indices = @transform_2, window_bounds = array<i64: 4, 16, 128>}]} {
    %c0_i32 = arith.constant 0 : i32
    %0 = arith.cmpi eq, %arg2, %c0_i32 : i32
    %1 = arith.extui %0 : i1 to i32
    %c0_i32_0 = arith.constant 0 : i32
    %2 = arith.cmpi ne, %1, %c0_i32_0 : i32
    scf.if %2 {
      %cst_97 = arith.constant 0.000000e+00 : f32
      %94 = vector.broadcast %cst_97 : f32 to vector<8x16x128xf32>
      %c0_98 = arith.constant 0 : index
      %c0_99 = arith.constant 0 : index
      %c0_100 = arith.constant 0 : index
      %95 = vector.load %arg6[%c0_98, %c0_99, %c0_100] : memref<8x16x128xf32, #tpu.memory_space<vmem>>, vector<8x16x128xf32>
      tpu.vector_store %arg6[%c0_98, %c0_99, %c0_100], %94 {strides = array<i32>} : memref<8x16x128xf32, #tpu.memory_space<vmem>>, vector<8x16x128xf32>,
    } else {
    }
    %c0 = arith.constant 0 : index
    %c0_1 = arith.constant 0 : index
    %c0_2 = arith.constant 0 : index
    %3 = vector.load %arg4[%c0, %c0_1, %c0_2] : memref<4x32x128xf32, #tpu.memory_space<vmem>>, vector<1x24x128xf32>
    %4 = vector.shape_cast %3 : vector<1x24x128xf32> to vector<24x128xf32>
    %c0_3 = arith.constant 0 : index
    %c0_4 = arith.constant 0 : index
    %c0_5 = arith.constant 0 : index
    %5 = vector.load %arg6[%c0_3, %c0_4, %c0_5] : memref<8x16x128xf32, #tpu.memory_space<vmem>>, vector<1x16x128xf32>
    %6 = vector.shape_cast %5 : vector<1x16x128xf32> to vector<16x128xf32>
    %c0_6 = arith.constant 0 : index
    %c0_7 = arith.constant 0 : index
    %c0_8 = arith.constant 0 : index
    %7 = vector.load %arg3[%c0_6, %c0_7, %c0_8] : memref<8x16x24xf32, #tpu.memory_space<vmem>>, vector<1x16x24xf32>
    %8 = vector.shape_cast %7 : vector<1x16x24xf32> to vector<16x24xf32>
    %cst = arith.constant dense<0.000000e+00> : vector<16x128xf32>
    %9 = tpu.matmul %8, %4, %cst {dimension_numbers = #tpu.dot_dimension_numbers<[1], [0], [0], [1], [0, 0, 1, 1], [], []>, precision = #tpu.contract_precision<fp32>} : vector<16x24xf32>, vector<24x128xf32>, vector<16x128xf32> -> vector<16x128xf32>
    %10 = arith.addf %6, %9 : vector<16x128xf32>
    %c0_9 = arith.constant 0 : index
    %c0_10 = arith.constant 0 : index
    %c0_11 = arith.constant 0 : index
    %11 = vector.load %arg6[%c0_9, %c0_10, %c0_11] : memref<8x16x128xf32, #tpu.memory_space<vmem>>, vector<1x16x128xf32>
    %12 = vector.shape_cast %11 : vector<1x16x128xf32> to vector<16x128xf32>
    %13 = vector.shape_cast %10 : vector<16x128xf32> to vector<1x16x128xf32>
    tpu.vector_store %arg6[%c0_9, %c0_10, %c0_11], %13 {strides = array<i32>} : memref<8x16x128xf32, #tpu.memory_space<vmem>>, vector<1x16x128xf32>,
    %c0_12 = arith.constant 0 : index
    %c8 = arith.constant 8 : index
    %c0_13 = arith.constant 0 : index
    %14 = vector.load %arg4[%c0_12, %c8, %c0_13] : memref<4x32x128xf32, #tpu.memory_space<vmem>>, vector<1x24x128xf32>
    %15 = vector.shape_cast %14 : vector<1x24x128xf32> to vector<24x128xf32>
    %c1 = arith.constant 1 : index
    %c0_14 = arith.constant 0 : index
    %c0_15 = arith.constant 0 : index
    %16 = vector.load %arg6[%c1, %c0_14, %c0_15] : memref<8x16x128xf32, #tpu.memory_space<vmem>>, vector<1x16x128xf32>
    %17 = vector.shape_cast %16 : vector<1x16x128xf32> to vector<16x128xf32>
    %c1_16 = arith.constant 1 : index
    %c0_17 = arith.constant 0 : index
    %c0_18 = arith.constant 0 : index
    %18 = vector.load %arg3[%c1_16, %c0_17, %c0_18] : memref<8x16x24xf32, #tpu.memory_space<vmem>>, vector<1x16x24xf32>
    %19 = vector.shape_cast %18 : vector<1x16x24xf32> to vector<16x24xf32>
    %cst_19 = arith.constant dense<0.000000e+00> : vector<16x128xf32>
    %20 = tpu.matmul %19, %15, %cst_19 {dimension_numbers = #tpu.dot_dimension_numbers<[1], [0], [0], [1], [0, 0, 1, 1], [], []>, precision = #tpu.contract_precision<fp32>} : vector<16x24xf32>, vector<24x128xf32>, vector<16x128xf32> -> vector<16x128xf32>
    %21 = arith.addf %17, %20 : vector<16x128xf32>
    %c1_20 = arith.constant 1 : index
    %c0_21 = arith.constant 0 : index
    %c0_22 = arith.constant 0 : index
    %22 = vector.load %arg6[%c1_20, %c0_21, %c0_22] : memref<8x16x128xf32, #tpu.memory_space<vmem>>, vector<1x16x128xf32>
    %23 = vector.shape_cast %22 : vector<1x16x128xf32> to vector<16x128xf32>
    %24 = vector.shape_cast %21 : vector<16x128xf32> to vector<1x16x128xf32>
    tpu.vector_store %arg6[%c1_20, %c0_21, %c0_22], %24 {strides = array<i32>} : memref<8x16x128xf32, #tpu.memory_space<vmem>>, vector<1x16x128xf32>,
    %c1_23 = arith.constant 1 : index
    %c0_24 = arith.constant 0 : index
    %c0_25 = arith.constant 0 : index
    %25 = vector.load %arg4[%c1_23, %c0_24, %c0_25] : memref<4x32x128xf32, #tpu.memory_space<vmem>>, vector<1x24x128xf32>
    %26 = vector.shape_cast %25 : vector<1x24x128xf32> to vector<24x128xf32>
    %c2 = arith.constant 2 : index
    %c0_26 = arith.constant 0 : index
    %c0_27 = arith.constant 0 : index
    %27 = vector.load %arg6[%c2, %c0_26, %c0_27] : memref<8x16x128xf32, #tpu.memory_space<vmem>>, vector<1x16x128xf32>
    %28 = vector.shape_cast %27 : vector<1x16x128xf32> to vector<16x128xf32>
    %c2_28 = arith.constant 2 : index
    %c0_29 = arith.constant 0 : index
    %c0_30 = arith.constant 0 : index
    %29 = vector.load %arg3[%c2_28, %c0_29, %c0_30] : memref<8x16x24xf32, #tpu.memory_space<vmem>>, vector<1x16x24xf32>
    %30 = vector.shape_cast %29 : vector<1x16x24xf32> to vector<16x24xf32>
    %cst_31 = arith.constant dense<0.000000e+00> : vector<16x128xf32>
    %31 = tpu.matmul %30, %26, %cst_31 {dimension_numbers = #tpu.dot_dimension_numbers<[1], [0], [0], [1], [0, 0, 1, 1], [], []>, precision = #tpu.contract_precision<fp32>} : vector<16x24xf32>, vector<24x128xf32>, vector<16x128xf32> -> vector<16x128xf32>
    %32 = arith.addf %28, %31 : vector<16x128xf32>
    %c2_32 = arith.constant 2 : index
    %c0_33 = arith.constant 0 : index
    %c0_34 = arith.constant 0 : index
    %33 = vector.load %arg6[%c2_32, %c0_33, %c0_34] : memref<8x16x128xf32, #tpu.memory_space<vmem>>, vector<1x16x128xf32>
    %34 = vector.shape_cast %33 : vector<1x16x128xf32> to vector<16x128xf32>
    %35 = vector.shape_cast %32 : vector<16x128xf32> to vector<1x16x128xf32>
    tpu.vector_store %arg6[%c2_32, %c0_33, %c0_34], %35 {strides = array<i32>} : memref<8x16x128xf32, #tpu.memory_space<vmem>>, vector<1x16x128xf32>,
    %c1_35 = arith.constant 1 : index
    %c8_36 = arith.constant 8 : index
    %c0_37 = arith.constant 0 : index
    %36 = vector.load %arg4[%c1_35, %c8_36, %c0_37] : memref<4x32x128xf32, #tpu.memory_space<vmem>>, vector<1x24x128xf32>
    %37 = vector.shape_cast %36 : vector<1x24x128xf32> to vector<24x128xf32>
    %c3 = arith.constant 3 : index
    %c0_38 = arith.constant 0 : index
    %c0_39 = arith.constant 0 : index
    %38 = vector.load %arg6[%c3, %c0_38, %c0_39] : memref<8x16x128xf32, #tpu.memory_space<vmem>>, vector<1x16x128xf32>
    %39 = vector.shape_cast %38 : vector<1x16x128xf32> to vector<16x128xf32>
    %c3_40 = arith.constant 3 : index
    %c0_41 = arith.constant 0 : index
    %c0_42 = arith.constant 0 : index
    %40 = vector.load %arg3[%c3_40, %c0_41, %c0_42] : memref<8x16x24xf32, #tpu.memory_space<vmem>>, vector<1x16x24xf32>
    %41 = vector.shape_cast %40 : vector<1x16x24xf32> to vector<16x24xf32>
    %cst_43 = arith.constant dense<0.000000e+00> : vector<16x128xf32>
    %42 = tpu.matmul %41, %37, %cst_43 {dimension_numbers = #tpu.dot_dimension_numbers<[1], [0], [0], [1], [0, 0, 1, 1], [], []>, precision = #tpu.contract_precision<fp32>} : vector<16x24xf32>, vector<24x128xf32>, vector<16x128xf32> -> vector<16x128xf32>
    %43 = arith.addf %39, %42 : vector<16x128xf32>
    %c3_44 = arith.constant 3 : index
    %c0_45 = arith.constant 0 : index
    %c0_46 = arith.constant 0 : index
    %44 = vector.load %arg6[%c3_44, %c0_45, %c0_46] : memref<8x16x128xf32, #tpu.memory_space<vmem>>, vector<1x16x128xf32>
    %45 = vector.shape_cast %44 : vector<1x16x128xf32> to vector<16x128xf32>
    %46 = vector.shape_cast %43 : vector<16x128xf32> to vector<1x16x128xf32>
    tpu.vector_store %arg6[%c3_44, %c0_45, %c0_46], %46 {strides = array<i32>} : memref<8x16x128xf32, #tpu.memory_space<vmem>>, vector<1x16x128xf32>,
    %c2_47 = arith.constant 2 : index
    %c0_48 = arith.constant 0 : index
    %c0_49 = arith.constant 0 : index
    %47 = vector.load %arg4[%c2_47, %c0_48, %c0_49] : memref<4x32x128xf32, #tpu.memory_space<vmem>>, vector<1x24x128xf32>
    %48 = vector.shape_cast %47 : vector<1x24x128xf32> to vector<24x128xf32>
    %c4 = arith.constant 4 : index
    %c0_50 = arith.constant 0 : index
    %c0_51 = arith.constant 0 : index
    %49 = vector.load %arg6[%c4, %c0_50, %c0_51] : memref<8x16x128xf32, #tpu.memory_space<vmem>>, vector<1x16x128xf32>
    %50 = vector.shape_cast %49 : vector<1x16x128xf32> to vector<16x128xf32>
    %c4_52 = arith.constant 4 : index
    %c0_53 = arith.constant 0 : index
    %c0_54 = arith.constant 0 : index
    %51 = vector.load %arg3[%c4_52, %c0_53, %c0_54] : memref<8x16x24xf32, #tpu.memory_space<vmem>>, vector<1x16x24xf32>
    %52 = vector.shape_cast %51 : vector<1x16x24xf32> to vector<16x24xf32>
    %cst_55 = arith.constant dense<0.000000e+00> : vector<16x128xf32>
    %53 = tpu.matmul %52, %48, %cst_55 {dimension_numbers = #tpu.dot_dimension_numbers<[1], [0], [0], [1], [0, 0, 1, 1], [], []>, precision = #tpu.contract_precision<fp32>} : vector<16x24xf32>, vector<24x128xf32>, vector<16x128xf32> -> vector<16x128xf32>
    %54 = arith.addf %50, %53 : vector<16x128xf32>
    %c4_56 = arith.constant 4 : index
    %c0_57 = arith.constant 0 : index
    %c0_58 = arith.constant 0 : index
    %55 = vector.load %arg6[%c4_56, %c0_57, %c0_58] : memref<8x16x128xf32, #tpu.memory_space<vmem>>, vector<1x16x128xf32>
    %56 = vector.shape_cast %55 : vector<1x16x128xf32> to vector<16x128xf32>
    %57 = vector.shape_cast %54 : vector<16x128xf32> to vector<1x16x128xf32>
    tpu.vector_store %arg6[%c4_56, %c0_57, %c0_58], %57 {strides = array<i32>} : memref<8x16x128xf32, #tpu.memory_space<vmem>>, vector<1x16x128xf32>,
    %c2_59 = arith.constant 2 : index
    %c8_60 = arith.constant 8 : index
    %c0_61 = arith.constant 0 : index
    %58 = vector.load %arg4[%c2_59, %c8_60, %c0_61] : memref<4x32x128xf32, #tpu.memory_space<vmem>>, vector<1x24x128xf32>
    %59 = vector.shape_cast %58 : vector<1x24x128xf32> to vector<24x128xf32>
    %c5 = arith.constant 5 : index
    %c0_62 = arith.constant 0 : index
    %c0_63 = arith.constant 0 : index
    %60 = vector.load %arg6[%c5, %c0_62, %c0_63] : memref<8x16x128xf32, #tpu.memory_space<vmem>>, vector<1x16x128xf32>
    %61 = vector.shape_cast %60 : vector<1x16x128xf32> to vector<16x128xf32>
    %c5_64 = arith.constant 5 : index
    %c0_65 = arith.constant 0 : index
    %c0_66 = arith.constant 0 : index
    %62 = vector.load %arg3[%c5_64, %c0_65, %c0_66] : memref<8x16x24xf32, #tpu.memory_space<vmem>>, vector<1x16x24xf32>
    %63 = vector.shape_cast %62 : vector<1x16x24xf32> to vector<16x24xf32>
    %cst_67 = arith.constant dense<0.000000e+00> : vector<16x128xf32>
    %64 = tpu.matmul %63, %59, %cst_67 {dimension_numbers = #tpu.dot_dimension_numbers<[1], [0], [0], [1], [0, 0, 1, 1], [], []>, precision = #tpu.contract_precision<fp32>} : vector<16x24xf32>, vector<24x128xf32>, vector<16x128xf32> -> vector<16x128xf32>
    %65 = arith.addf %61, %64 : vector<16x128xf32>
    %c5_68 = arith.constant 5 : index
    %c0_69 = arith.constant 0 : index
    %c0_70 = arith.constant 0 : index
    %66 = vector.load %arg6[%c5_68, %c0_69, %c0_70] : memref<8x16x128xf32, #tpu.memory_space<vmem>>, vector<1x16x128xf32>
    %67 = vector.shape_cast %66 : vector<1x16x128xf32> to vector<16x128xf32>
    %68 = vector.shape_cast %65 : vector<16x128xf32> to vector<1x16x128xf32>
    tpu.vector_store %arg6[%c5_68, %c0_69, %c0_70], %68 {strides = array<i32>} : memref<8x16x128xf32, #tpu.memory_space<vmem>>, vector<1x16x128xf32>,
    %c3_71 = arith.constant 3 : index
    %c0_72 = arith.constant 0 : index
    %c0_73 = arith.constant 0 : index
    %69 = vector.load %arg4[%c3_71, %c0_72, %c0_73] : memref<4x32x128xf32, #tpu.memory_space<vmem>>, vector<1x24x128xf32>
    %70 = vector.shape_cast %69 : vector<1x24x128xf32> to vector<24x128xf32>
    %c6 = arith.constant 6 : index
    %c0_74 = arith.constant 0 : index
    %c0_75 = arith.constant 0 : index
    %71 = vector.load %arg6[%c6, %c0_74, %c0_75] : memref<8x16x128xf32, #tpu.memory_space<vmem>>, vector<1x16x128xf32>
    %72 = vector.shape_cast %71 : vector<1x16x128xf32> to vector<16x128xf32>
    %c6_76 = arith.constant 6 : index
    %c0_77 = arith.constant 0 : index
    %c0_78 = arith.constant 0 : index
    %73 = vector.load %arg3[%c6_76, %c0_77, %c0_78] : memref<8x16x24xf32, #tpu.memory_space<vmem>>, vector<1x16x24xf32>
    %74 = vector.shape_cast %73 : vector<1x16x24xf32> to vector<16x24xf32>
    %cst_79 = arith.constant dense<0.000000e+00> : vector<16x128xf32>
    %75 = tpu.matmul %74, %70, %cst_79 {dimension_numbers = #tpu.dot_dimension_numbers<[1], [0], [0], [1], [0, 0, 1, 1], [], []>, precision = #tpu.contract_precision<fp32>} : vector<16x24xf32>, vector<24x128xf32>, vector<16x128xf32> -> vector<16x128xf32>
    %76 = arith.addf %72, %75 : vector<16x128xf32>
    %c6_80 = arith.constant 6 : index
    %c0_81 = arith.constant 0 : index
    %c0_82 = arith.constant 0 : index
    %77 = vector.load %arg6[%c6_80, %c0_81, %c0_82] : memref<8x16x128xf32, #tpu.memory_space<vmem>>, vector<1x16x128xf32>
    %78 = vector.shape_cast %77 : vector<1x16x128xf32> to vector<16x128xf32>
    %79 = vector.shape_cast %76 : vector<16x128xf32> to vector<1x16x128xf32>
    tpu.vector_store %arg6[%c6_80, %c0_81, %c0_82], %79 {strides = array<i32>} : memref<8x16x128xf32, #tpu.memory_space<vmem>>, vector<1x16x128xf32>,
    %c3_83 = arith.constant 3 : index
    %c8_84 = arith.constant 8 : index
    %c0_85 = arith.constant 0 : index
    %80 = vector.load %arg4[%c3_83, %c8_84, %c0_85] : memref<4x32x128xf32, #tpu.memory_space<vmem>>, vector<1x24x128xf32>
    %81 = vector.shape_cast %80 : vector<1x24x128xf32> to vector<24x128xf32>
    %c7 = arith.constant 7 : index
    %c0_86 = arith.constant 0 : index
    %c0_87 = arith.constant 0 : index
    %82 = vector.load %arg6[%c7, %c0_86, %c0_87] : memref<8x16x128xf32, #tpu.memory_space<vmem>>, vector<1x16x128xf32>
    %83 = vector.shape_cast %82 : vector<1x16x128xf32> to vector<16x128xf32>
    %c7_88 = arith.constant 7 : index
    %c0_89 = arith.constant 0 : index
    %c0_90 = arith.constant 0 : index
    %84 = vector.load %arg3[%c7_88, %c0_89, %c0_90] : memref<8x16x24xf32, #tpu.memory_space<vmem>>, vector<1x16x24xf32>
    %85 = vector.shape_cast %84 : vector<1x16x24xf32> to vector<16x24xf32>
    %cst_91 = arith.constant dense<0.000000e+00> : vector<16x128xf32>
    %86 = tpu.matmul %85, %81, %cst_91 {dimension_numbers = #tpu.dot_dimension_numbers<[1], [0], [0], [1], [0, 0, 1, 1], [], []>, precision = #tpu.contract_precision<fp32>} : vector<16x24xf32>, vector<24x128xf32>, vector<16x128xf32> -> vector<16x128xf32>
    %87 = arith.addf %83, %86 : vector<16x128xf32>
    %c7_92 = arith.constant 7 : index
    %c0_93 = arith.constant 0 : index
    %c0_94 = arith.constant 0 : index
    %88 = vector.load %arg6[%c7_92, %c0_93, %c0_94] : memref<8x16x128xf32, #tpu.memory_space<vmem>>, vector<1x16x128xf32>
    %89 = vector.shape_cast %88 : vector<1x16x128xf32> to vector<16x128xf32>
    %90 = vector.shape_cast %87 : vector<16x128xf32> to vector<1x16x128xf32>
    tpu.vector_store %arg6[%c7_92, %c0_93, %c0_94], %90 {strides = array<i32>} : memref<8x16x128xf32, #tpu.memory_space<vmem>>, vector<1x16x128xf32>,
    %c0_i32_95 = arith.constant 0 : i32
    %91 = arith.cmpi eq, %arg2, %c0_i32_95 : i32
    %92 = arith.extui %91 : i1 to i32
    %c0_i32_96 = arith.constant 0 : i32
    %93 = arith.cmpi ne, %92, %c0_i32_96 : i32
    scf.if %93 {
      %c0_97 = arith.constant 0 : index
      %c0_98 = arith.constant 0 : index
      %c0_99 = arith.constant 0 : index
      %94 = vector.load %arg6[%c0_97, %c0_98, %c0_99] : memref<8x16x128xf32, #tpu.memory_space<vmem>>, vector<1x16x128xf32>
      %95 = vector.shape_cast %94 : vector<1x16x128xf32> to vector<16x128xf32>
      %c2_100 = arith.constant 2 : index
      %c0_101 = arith.constant 0 : index
      %c0_102 = arith.constant 0 : index
      %96 = vector.load %arg6[%c2_100, %c0_101, %c0_102] : memref<8x16x128xf32, #tpu.memory_space<vmem>>, vector<1x16x128xf32>
      %97 = vector.shape_cast %96 : vector<1x16x128xf32> to vector<16x128xf32>
      %98 = arith.addf %95, %97 : vector<16x128xf32>
      %c4_103 = arith.constant 4 : index
      %c0_104 = arith.constant 0 : index
      %c0_105 = arith.constant 0 : index
      %99 = vector.load %arg6[%c4_103, %c0_104, %c0_105] : memref<8x16x128xf32, #tpu.memory_space<vmem>>, vector<1x16x128xf32>
      %100 = vector.shape_cast %99 : vector<1x16x128xf32> to vector<16x128xf32>
      %101 = arith.addf %98, %100 : vector<16x128xf32>
      %c0_106 = arith.constant 0 : index
      %c0_107 = arith.constant 0 : index
      %c0_108 = arith.constant 0 : index
      %102 = vector.load %arg5[%c0_106, %c0_107, %c0_108] : memref<4x16x128xf32, #tpu.memory_space<vmem>>, vector<1x16x128xf32>
      %103 = vector.shape_cast %102 : vector<1x16x128xf32> to vector<16x128xf32>
      %104 = vector.shape_cast %101 : vector<16x128xf32> to vector<1x16x128xf32>
      tpu.vector_store %arg5[%c0_106, %c0_107, %c0_108], %104 {strides = array<i32>} : memref<4x16x128xf32, #tpu.memory_space<vmem>>, vector<1x16x128xf32>,
      %c1_109 = arith.constant 1 : index
      %c0_110 = arith.constant 0 : index
      %c0_111 = arith.constant 0 : index
      %105 = vector.load %arg6[%c1_109, %c0_110, %c0_111] : memref<8x16x128xf32, #tpu.memory_space<vmem>>, vector<1x16x128xf32>
      %106 = vector.shape_cast %105 : vector<1x16x128xf32> to vector<16x128xf32>
      %c3_112 = arith.constant 3 : index
      %c0_113 = arith.constant 0 : index
      %c0_114 = arith.constant 0 : index
      %107 = vector.load %arg6[%c3_112, %c0_113, %c0_114] : memref<8x16x128xf32, #tpu.memory_space<vmem>>, vector<1x16x128xf32>
      %108 = vector.shape_cast %107 : vector<1x16x128xf32> to vector<16x128xf32>
      %109 = arith.addf %106, %108 : vector<16x128xf32>
      %c5_115 = arith.constant 5 : index
      %c0_116 = arith.constant 0 : index
      %c0_117 = arith.constant 0 : index
      %110 = vector.load %arg6[%c5_115, %c0_116, %c0_117] : memref<8x16x128xf32, #tpu.memory_space<vmem>>, vector<1x16x128xf32>
      %111 = vector.shape_cast %110 : vector<1x16x128xf32> to vector<16x128xf32>
      %112 = arith.addf %109, %111 : vector<16x128xf32>
      %c1_118 = arith.constant 1 : index
      %c0_119 = arith.constant 0 : index
      %c0_120 = arith.constant 0 : index
      %113 = vector.load %arg5[%c1_118, %c0_119, %c0_120] : memref<4x16x128xf32, #tpu.memory_space<vmem>>, vector<1x16x128xf32>
      %114 = vector.shape_cast %113 : vector<1x16x128xf32> to vector<16x128xf32>
      %115 = vector.shape_cast %112 : vector<16x128xf32> to vector<1x16x128xf32>
      tpu.vector_store %arg5[%c1_118, %c0_119, %c0_120], %115 {strides = array<i32>} : memref<4x16x128xf32, #tpu.memory_space<vmem>>, vector<1x16x128xf32>,
      %c2_121 = arith.constant 2 : index
      %c0_122 = arith.constant 0 : index
      %c0_123 = arith.constant 0 : index
      %116 = vector.load %arg6[%c2_121, %c0_122, %c0_123] : memref<8x16x128xf32, #tpu.memory_space<vmem>>, vector<1x16x128xf32>
      %117 = vector.shape_cast %116 : vector<1x16x128xf32> to vector<16x128xf32>
      %c4_124 = arith.constant 4 : index
      %c0_125 = arith.constant 0 : index
      %c0_126 = arith.constant 0 : index
      %118 = vector.load %arg6[%c4_124, %c0_125, %c0_126] : memref<8x16x128xf32, #tpu.memory_space<vmem>>, vector<1x16x128xf32>
      %119 = vector.shape_cast %118 : vector<1x16x128xf32> to vector<16x128xf32>
      %120 = arith.subf %117, %119 : vector<16x128xf32>
      %c6_127 = arith.constant 6 : index
      %c0_128 = arith.constant 0 : index
      %c0_129 = arith.constant 0 : index
      %121 = vector.load %arg6[%c6_127, %c0_128, %c0_129] : memref<8x16x128xf32, #tpu.memory_space<vmem>>, vector<1x16x128xf32>
      %122 = vector.shape_cast %121 : vector<1x16x128xf32> to vector<16x128xf32>
      %123 = arith.subf %120, %122 : vector<16x128xf32>
      %c2_130 = arith.constant 2 : index
      %c0_131 = arith.constant 0 : index
      %c0_132 = arith.constant 0 : index
      %124 = vector.load %arg5[%c2_130, %c0_131, %c0_132] : memref<4x16x128xf32, #tpu.memory_space<vmem>>, vector<1x16x128xf32>
      %125 = vector.shape_cast %124 : vector<1x16x128xf32> to vector<16x128xf32>
      %126 = vector.shape_cast %123 : vector<16x128xf32> to vector<1x16x128xf32>
      tpu.vector_store %arg5[%c2_130, %c0_131, %c0_132], %126 {strides = array<i32>} : memref<4x16x128xf32, #tpu.memory_space<vmem>>, vector<1x16x128xf32>,
      %c3_133 = arith.constant 3 : index
      %c0_134 = arith.constant 0 : index
      %c0_135 = arith.constant 0 : index
      %127 = vector.load %arg6[%c3_133, %c0_134, %c0_135] : memref<8x16x128xf32, #tpu.memory_space<vmem>>, vector<1x16x128xf32>
      %128 = vector.shape_cast %127 : vector<1x16x128xf32> to vector<16x128xf32>
      %c5_136 = arith.constant 5 : index
      %c0_137 = arith.constant 0 : index
      %c0_138 = arith.constant 0 : index
      %129 = vector.load %arg6[%c5_136, %c0_137, %c0_138] : memref<8x16x128xf32, #tpu.memory_space<vmem>>, vector<1x16x128xf32>
      %130 = vector.shape_cast %129 : vector<1x16x128xf32> to vector<16x128xf32>
      %131 = arith.subf %128, %130 : vector<16x128xf32>
      %c7_139 = arith.constant 7 : index
      %c0_140 = arith.constant 0 : index
      %c0_141 = arith.constant 0 : index
      %132 = vector.load %arg6[%c7_139, %c0_140, %c0_141] : memref<8x16x128xf32, #tpu.memory_space<vmem>>, vector<1x16x128xf32>
      %133 = vector.shape_cast %132 : vector<1x16x128xf32> to vector<16x128xf32>
      %134 = arith.subf %131, %133 : vector<16x128xf32>
      %c3_142 = arith.constant 3 : index
      %c0_143 = arith.constant 0 : index
      %c0_144 = arith.constant 0 : index
      %135 = vector.load %arg5[%c3_142, %c0_143, %c0_144] : memref<4x16x128xf32, #tpu.memory_space<vmem>>, vector<1x16x128xf32>
      %136 = vector.shape_cast %135 : vector<1x16x128xf32> to vector<16x128xf32>
      %137 = vector.shape_cast %134 : vector<16x128xf32> to vector<1x16x128xf32>
      tpu.vector_store %arg5[%c3_142, %c0_143, %c0_144], %137 {strides = array<i32>} : memref<4x16x128xf32, #tpu.memory_space<vmem>>, vector<1x16x128xf32>,
    } else {
    }
    return
  }
  func.func @transform_0(%arg0: i32, %arg1: i32, %arg2: i32) -> (i32, i32, i32) {
    %c0_i32 = arith.constant 0 : i32
    %c0_i32_0 = arith.constant 0 : i32
    return %c0_i32, %arg1, %arg2 : i32, i32, i32
  }
  func.func @transform_1(%arg0: i32, %arg1: i32, %arg2: i32) -> (i32, i32, i32) {
    %c0_i32 = arith.constant 0 : i32
    %c0_i32_0 = arith.constant 0 : i32
    return %c0_i32, %arg2, %arg0 : i32, i32, i32
  }
  func.func @transform_2(%arg0: i32, %arg1: i32, %arg2: i32) -> (i32, i32, i32) {
    %c0_i32 = arith.constant 0 : i32
    %c0_i32_0 = arith.constant 0 : i32
    return %c0_i32, %arg1, %arg0 : i32, i32, i32
  }
}

</mosaic_0001>

<bundles_post_ra>
// kernel: tpu_custom_call.1
= control target key start
LH: loop header
LB: loop body
LE: loop exit
PB: predicated region body
PF: predicated region fallthrough
CT: control target
= control target key end

     0   :  { %7 = vsyncpa [#allocation4], 0  ;;  %s5909_s0 = inlined_call_operand.hbm [shape: f32[8,16,24], index: 0, kind: input, shape index: {}]   ;;  %s5910_s1 = inlined_call_operand.hbm [shape: f32[4,32,128], index: 1, kind: input, shape index: {}]   ;;  %s5911_s2 = inlined_call_operand.hbm [shape: f32[4,16,128], index: 2, kind: output, shape index: {}]  }
   0x1   :  { %8 = vsyncpa [#allocation7], 0 }
   0x2   :  { %9 = vsyncpa [#allocation5], 0  ;;  %s5149_s9 = smov [#allocation3]  }
   0x3   :  { %s15_s10 = sshll.u32 %s5149_s9, 4  ;;  %s16_s10 = int_to_ptr.vmem [resolvable:$true] %s15_s10 }
   0x4   :  { %s5091_s11 = scalar_lea.vmem %s16_s10, 2048  ;;  %p5096_p1 = scmp.lt.s32.totalorder %s16_s10, %s16_s10 }
   0x5   :  { %p5092_p0 = scmp.ne.s32.totalorder %s16_s10, %s5091_s11  ;;  %p5097_p2 = scmp.lt.s32.totalorder %s5091_s11, %s5091_s11 }
   0x7   :  { %p5098_p3 = por %p5097_p2, %p5096_p1 }
   0x9   :  { %p5099_p4 = pnand %p5098_p3, %p5092_p0 }
   0xb   :  { %5102 = shalt.err (!%p5099_p4)
}
   0xc   :  { %s5150_s12 = smov 128   ;;  %s5151_s13 = smov 8  }
   0xd   :  { %21 = dma.hbm_to_vmem [thread:$0]  %s5909_s0, 2048, %s16_s10, [#allocation4], %s5150_s12, %s5150_s12, %s5151_s13  }
   0xe   :  { %s5152_s16 = smov [#allocation6]  }
   0xf   :  { %s27_s17 = sshll.u32 %s5152_s16, 4  ;;  %s28_s17 = int_to_ptr.vmem [resolvable:$true] %s27_s17 }
  0x10   :  { %s5111_s18 = scalar_lea.vmem %s28_s17, 2048  ;;  %p5116_p6 = scmp.lt.s32.totalorder %s28_s17, %s28_s17 }
  0x11   :  { %p5112_p5 = scmp.ne.s32.totalorder %s28_s17, %s5111_s18  ;;  %p5117_p7 = scmp.lt.s32.totalorder %s5111_s18, %s5111_s18 }
  0x13   :  { %p5118_p8 = por %p5117_p7, %p5116_p6 }
  0x15   :  { %p5119_p9 = pnand %p5118_p8, %p5112_p5 }
  0x17   :  { %5122 = shalt.err (!%p5119_p9)
}
  0x18   :  { %33 = dma.hbm_to_vmem [thread:$0]  %s5910_s1, 2048, %s28_s17, [#allocation7], %s5150_s12, %s5150_s12, %s5151_s13  }
  0x19   :  { %5143 = dma.done.wait [#allocation4], 2048  }
  0x1a   :  { %5144 = vsyncadd [#allocation4], 4294965248 }
  0x1b   :  { %5145 = dma.done.wait [#allocation7], 2048  }
  0x1c   :  { %5146 = vsyncadd [#allocation7], 4294965248  ;;  %vm67_vm0 = vcmask 195584   ;;  %v62_v0 = vld [vmem:[#allocation6 + $0x10] sm:$0xff]  ;;  %v61_v1 = vld [vmem:[#allocation6 + $0x8] sm:$0xff]  ;;  %s5153_s0 = smov [#allocation8]  }
  0x1d   :  { %v60_v2 = vld [vmem:[#allocation6] sm:$0xff]  ;;  %v5181_v3 = vand.u32 4294901760, %v62_v0  ;;  %v5183_v4 = vand.u32 4294901760, %v61_v1  ;;  %v66_v7 = vld [vmem:[#allocation3 + $0x8] sm:$0xff]  ;;  %v600_v29 = vld [vmem:[#allocation3 + $0x10] sm:$0xff]  ;;  %s4393_s1 = sshll.u32 %s5153_s0, 4  ;;  %s4394_s1 = int_to_ptr.vmem [resolvable:$true] %s4393_s1 }
  0x1e   :  { %v5185_v5 = vand.u32 4294901760, %v60_v2  ;;  %v65_v6 = vld [vmem:[#allocation3] sm:$0xff]  ;;  %v72_v9 = vsel %vm67_vm0, %v66_v7, 0  ;;  %v595_v33 = vld [vmem:[#allocation6 + $0x18] sm:$0xff]  ;;  %v603_v35 = vsel %vm67_vm0, %v600_v29, 0  ;;  %v1130_v53 = vld [vmem:[#allocation6 + $0x30] sm:$0xff]  ;;  %p5128_p11 = scmp.lt.s32.totalorder %s4394_s1, %s4394_s1 }
  0x1f   :  { %v69_v8 = vsel %vm67_vm0, %v65_v6, 0  ;;  %4646 = vmatprep.subr.mxu0 %v5181_v3  ;;  %v5191_v10 = vsub.f32 %v62_v0, %v5181_v3  ;;  %v5196_v12 = vsub.f32 %v61_v1, %v5183_v4  ;;  %v5198_v13 = vand.u32 4294901760, %v72_v9  ;;  %v601_v34 = vld [vmem:[#allocation3 + $0x18] sm:$0xff]  ;;  %v1135_v52 = vld [vmem:[#allocation3 + $0x20] sm:$0xff]  ;;  %v1136_v54 = vld [vmem:[#allocation3 + $0x28] sm:$0xff]  ;;  %s5123_s21 = scalar_lea.vmem %s4394_s1, 1024 }
  0x20   :  { %v5193_v11 = vand.u32 4294901760, %v69_v8  ;;  %4647 = vmatpush3.msra.mxu0 %v5181_v3  ;;  %v204_v14 = vsub.f32 %v60_v2, %v5185_v5  ;;  %v5229_v36 = vand.u32 4294901760, %v595_v33  ;;  %v606_v37 = vsel %vm67_vm0, %v601_v34, 0  ;;  %v1129_v55 = vld [vmem:[#allocation6 + $0x28] sm:$0xff]  ;;  %v1128_v60 = vld [vmem:[#allocation6 + $0x20] sm:$0xff]  ;;  %p5124_p10 = scmp.ne.s32.totalorder %s4394_s1, %s5123_s21  ;;  %p5129_p12 = scmp.lt.s32.totalorder %s5123_s21, %s5123_s21 }
  0x21   :  { %4648 = vmatprep.subr.mxu0 %v5183_v4  ;;  %v5204_v15 = vand.u32 4294901760, %v5191_v10  ;;  %v5208_v17 = vand.u32 4294901760, %v5196_v12  ;;  %v153_v18 = vsub.f32 %v72_v9, %v5198_v13  ;;  %v5234_v38 = vand.u32 4294901760, %v603_v35 }
  0x22   :  { %v143_v16 = vsub.f32 %v69_v8, %v5193_v11  ;;  %4661 = vmatprep.mubr.f32.mxu1 %v5193_v11  ;;  %4649 = vmatpush3.msra.mxu0 %v5183_v4  ;;  %v205_v19 = vand.u32 4294901760, %v204_v14  ;;  %v5238_v39 = vand.u32 4294901760, %v606_v37  ;;  %v724_v40 = vsub.f32 %v595_v33, %v5229_v36  ;;  %p5130_p13 = por %p5129_p12, %p5128_p11 }
  0x23   :  { %4650 = vmatprep.subr.mxu0 %v5185_v5  ;;  %v192_v20 = vsub.f32 %v5191_v10, %v5204_v15  ;;  %v199_v22 = vsub.f32 %v5196_v12, %v5208_v17  ;;  %v154_v23 = vand.u32 4294901760, %v153_v18  ;;  %v5244_v41 = vsub.f32 %v603_v35, %v5234_v38 }
  0x24   :  { %v144_v21 = vand.u32 4294901760, %v143_v16  ;;  %4651 = vmatpush3.msra.mxu0 %v5185_v5  ;;  %v206_v24 = vsub.f32 %v204_v14, %v205_v19  ;;  %v5249_v42 = vsub.f32 %v606_v37, %v5238_v39  ;;  %v5253_v43 = vand.u32 4294901760, %v724_v40  ;;  %p5131_p0 = pnand %p5130_p13, %p5124_p10 }
  0x25   :  { %v5219_v25 = vand.u32 4294901760, %v192_v20  ;;  %v5221_v27 = vand.u32 4294901760, %v199_v22  ;;  %4664 = vmatprep.subr.mxu0 %v5191_v10  ;;  %v155_v28 = vsub.f32 %v153_v18, %v154_v23  ;;  %v678_v44 = vand.u32 4294901760, %v5244_v41  ;;  %v1669_v20 = vld [vmem:[#allocation3 + $0x30] sm:$0xff]  ;;  %v1670_v22 = vld [vmem:[#allocation3 + $0x38] sm:$0xff] }
  0x26   :  { %v145_v26 = vsub.f32 %v143_v16, %v144_v21  ;;  %v207_v32 = vand.u32 4294901760, %v206_v24  ;;  %v688_v45 = vand.u32 4294901760, %v5249_v42  ;;  %v726_v46 = vsub.f32 %v724_v40, %v5253_v43 }
  0x27   :  { %4655 = vmatprep.subr.mxu1 %v5219_v25  ;;  %v156_v31 = vand.u32 4294901760, %v155_v28  ;;  %v679_v47 = vsub.f32 %v5244_v41, %v678_v44  ;;  %v1138_v56 = vsel %vm67_vm0, %v1135_v52, 0  ;;  %v5287_v57 = vand.u32 4294901760, %v1130_v53 }
  0x28   :  { %v146_v30 = vand.u32 4294901760, %v145_v26  ;;  %4656 = vmatpush3.msra.mxu1 %v5219_v25  ;;  %v689_v48 = vsub.f32 %v5249_v42, %v688_v45  ;;  %v727_v49 = vand.u32 4294901760, %v726_v46  ;;  %v1141_v58 = vsel %vm67_vm0, %v1136_v54, 0 }
  0x29   :  { %4657 = vmatprep.subr.mxu1 %v5221_v27  ;;  %v680_v50 = vand.u32 4294901760, %v679_v47  ;;  %v5294_v59 = vand.u32 4294901760, %v1129_v55  ;;  %v5296_v61 = vand.u32 4294901760, %v1138_v56  ;;  %v5300_v62 = vand.u32 4294901760, %v1141_v58 }
  0x2a   :  { %4652 = vmatprep.mubr.f32.mxu0 %v146_v30  ;;  %4658 = vmatpush3.msra.mxu1 %v5221_v27  ;;  %v690_v51 = vand.u32 4294901760, %v689_v48  ;;  %v5305_v63 = vsub.f32 %v1130_v53, %v5287_v57  ;;  %v5309_v0 = vand.u32 4294901760, %v1128_v60  ;;  %v2197_v48 = vld [vmem:[#allocation6 + $0x40] sm:$0xff] }
  0x2b   :  { %4653 = vmatmul.mubr.f32.vlgmr.msra.gmra.mxu0 %v156_v31  ;;  %4659 = vmatprep.subr.mxu1 %v207_v32  ;;  %v5314_v1 = vsub.f32 %v1138_v56, %v5296_v61  ;;  %v5317_v2 = vsub.f32 %v1129_v55, %v5294_v59  ;;  %v5473_v52 = vand.u32 4294901760, %v2197_v48 }
  0x2c   :  { %4665 = vmatpush3.msra.mxu0 %v5191_v10  ;;  %4660 = vmatpush3.msra.mxu1 %v207_v32  ;;  %v5327_v6 = vand.u32 4294901760, %v5305_v63  ;;  %v1273_v7 = vsub.f32 %v1128_v60, %v5309_v0 }
  0x2d   :  { %4666 = vmatprep.subr.mxu0 %v5196_v12  ;;  %4662 = vmatmul.mubr.f32.vlgmr.msra.gmra.mxu1 %v5198_v13  ;;  %v1213_v8 = vand.u32 4294901760, %v5314_v1  ;;  %v5337_v9 = vand.u32 4294901760, %v5317_v2 }
  0x2e   :  { %4667 = vmatpush3.msra.mxu0 %v5196_v12  ;;  %4673 = vmatprep.subr.mxu1 %v5181_v3 }
  0x2f   :  { %4668 = vmatprep.subr.mxu0 %v204_v14  ;;  %4670 = vmatprep.mubr.f32.mxu0 %v143_v16 }
  0x30   :  { %4669 = vmatpush3.msra.mxu0 %v204_v14  ;;  %4674 = vmatpush3.msra.mxu1 %v5181_v3  ;;  %v1268_v14 = vsub.f32 %v5317_v2, %v5337_v9 }
  0x31   :  { %4671 = vmatmul.mubr.f32.vlgmr.msra.gmra.mxu0 %v153_v18  ;;  %4675 = vmatprep.subr.mxu1 %v5183_v4 }
  0x32   :  { %4682 = vmatprep.subr.mxu0 %v5204_v15  ;;  %4676 = vmatpush3.msra.mxu1 %v5183_v4 }
  0x33   :  { %4683 = vmatpush3.msra.mxu0 %v5204_v15  ;;  %4677 = vmatprep.subr.mxu1 %v5185_v5 }
  0x34   :  { %4684 = vmatprep.subr.mxu0 %v5208_v17  ;;  %4678 = vmatpush3.msra.mxu1 %v5185_v5 }
  0x35   :  { %4679 = vmatprep.mubr.f32.mxu1 %v144_v21  ;;  %4685 = vmatpush3.msra.mxu0 %v5208_v17  ;;  %v1664_v21 = vld [vmem:[#allocation6 + $0x38] sm:$0xff] }
  0x36   :  { %4680 = vmatmul.mubr.f32.vlgmr.msra.gmra.mxu1 %v154_v23  ;;  %4686 = vmatprep.subr.mxu0 %v205_v19  ;;  %v1672_v23 = vsel %vm67_vm0, %v1669_v20, 0  ;;  %v5385_v24 = vand.u32 4294901760, %v1664_v21 }
  0x37   :  { %4691 = vmatprep.subr.mxu1 %v5181_v3  ;;  %4687 = vmatpush3.msra.mxu0 %v205_v19  ;;  %v5372_v19 = vand.u32 4294901760, %v1268_v14  ;;  %v5390_v26 = vand.u32 4294901760, %v1672_v23 }
  0x38   :  { %4688 = vmatprep.mubr.f32.mxu0 %v5193_v11  ;;  %4692 = vmatpush3.msra.mxu1 %v5181_v3  ;;  %v1793_v28 = vsub.f32 %v1664_v21, %v5385_v24 }
  0x39   :  { %4689 = vmatmul.mubr.f32.vlgmr.msra.gmra.mxu0 %v5198_v13  ;;  %4693 = vmatprep.subr.mxu1 %v5183_v4  ;;  %v5402_v29 = vsub.f32 %v1672_v23, %v5390_v26 }
  0x3a   :  { %4700 = vmatprep.subr.mxu0 %v5229_v36  ;;  %4694 = vmatpush3.msra.mxu1 %v5183_v4  ;;  %v5411_v31 = vand.u32 4294901760, %v1793_v28 }
  0x3b   :  { %4701 = vmatpush3.msra.mxu0 %v5229_v36  ;;  %4695 = vmatprep.subr.mxu1 %v5185_v5  ;;  %v1747_v32 = vand.u32 4294901760, %v5402_v29 }
  0x3c   :  { %4702 = vmatprep.subr.mxu0 %v5181_v3  ;;  %4696 = vmatpush3.msra.mxu1 %v5185_v5  ;;  %v5322_v5 = vsub.f32 %v1141_v58, %v5300_v62  ;;  %v1795_v34 = vsub.f32 %v1793_v28, %v5411_v31  ;;  %v2342_v58 = vsub.f32 %v2197_v48, %v5473_v52 }
  0x3d   :  { %4697 = vmatprep.mubr.f32.mxu1 %v5193_v11  ;;  %4703 = vmatpush3.msra.mxu0 %v5181_v3  ;;  %v1261_v11 = vsub.f32 %v5305_v63, %v5327_v6  ;;  %v1748_v35 = vsub.f32 %v5402_v29, %v1747_v32 }
  0x3e   :  { %4698 = vmatmul.mubr.f32.vlgmr.msra.gmra.mxu1 %v5198_v13  ;;  %4704 = vmatprep.subr.mxu0 %v5183_v4  ;;  %v1214_v13 = vsub.f32 %v5314_v1, %v1213_v8  ;;  %v1796_v37 = vand.u32 4294901760, %v1795_v34 }
  0x3f   :  { %4709 = vmatprep.subr.mxu1 %v727_v49  ;;  %4705 = vmatpush3.msra.mxu0 %v5183_v4  ;;  %v5365_v16 = vand.u32 4294901760, %v1261_v11  ;;  %v2733_v11 = vld [vmem:[#allocation6 + $0x58] sm:$0xff] }
  0x40   :  { %4710 = vmatpush3.msra.mxu1 %v727_v49  ;;  %4706 = vmatprep.mubr.f32.mxu0 %v680_v50  ;;  %v1215_v18 = vand.u32 4294901760, %v1214_v13  ;;  %v5549_v14 = vand.u32 4294901760, %v2733_v11 }
  0x41   :  { %4711 = vmatprep.subr.mxu1 %v5219_v25  ;;  %4718 = vmatprep.subr.mxu0 %v724_v40 }
  0x42   :  { %4707 = vmatmul.mubr.f32.vlgmr.msra.gmra.mxu0 %v690_v51  ;;  %4712 = vmatpush3.msra.mxu1 %v5219_v25  ;;  %v1675_v25 = vsel %vm67_vm0, %v1670_v22, 0 }
  0x43   :  { %4719 = vmatpush3.msra.mxu0 %v724_v40  ;;  %4713 = vmatprep.subr.mxu1 %v5221_v27  ;;  %v2204_v40 = vld [vmem:[#allocation3 + $0x40] sm:$0xff] }
  0x44   :  { %4720 = vmatprep.subr.mxu0 %v5191_v10  ;;  %4714 = vmatpush3.msra.mxu1 %v5221_v27  ;;  %v5394_v27 = vand.u32 4294901760, %v1675_v25 }
  0x45   :  { %4715 = vmatprep.mubr.f32.mxu1 %v5234_v38  ;;  %4721 = vmatpush3.msra.mxu0 %v5191_v10  ;;  %v1223_v10 = vand.u32 4294901760, %v5322_v5 }
  0x46   :  { %4716 = vmatmul.mubr.f32.vlgmr.msra.gmra.mxu1 %v5238_v39  ;;  %4722 = vmatprep.subr.mxu0 %v5196_v12  ;;  %v5407_v30 = vsub.f32 %v1675_v25, %v5394_v27 }
  0x47   :  { %4727 = vmatprep.subr.mxu1 %v5229_v36  ;;  %4723 = vmatpush3.msra.mxu0 %v5196_v12  ;;  %v5349_v12 = vand.u32 4294901760, %v1273_v7 }
  0x48   :  { %4724 = vmatprep.mubr.f32.mxu0 %v5244_v41  ;;  %4728 = vmatpush3.msra.mxu1 %v5229_v36  ;;  %v1757_v33 = vand.u32 4294901760, %v5407_v30  ;;  %v2199_v41 = vld [vmem:[#allocation6 + $0x50] sm:$0xff] }
  0x49   :  { %4725 = vmatmul.mubr.f32.vlgmr.msra.gmra.mxu0 %v5249_v42  ;;  %4729 = vmatprep.subr.mxu1 %v5181_v3  ;;  %v2205_v42 = vld [vmem:[#allocation3 + $0x48] sm:$0xff] }
  0x4a   :  { %4736 = vmatprep.subr.mxu0 %v5253_v43  ;;  %4730 = vmatpush3.msra.mxu1 %v5181_v3  ;;  %v2210_v46 = vsel %vm67_vm0, %v2205_v42, 0 }
  0x4b   :  { %4737 = vmatpush3.msra.mxu0 %v5253_v43  ;;  %4731 = vmatprep.subr.mxu1 %v5183_v4  ;;  %v2198_v43 = vld [vmem:[#allocation6 + $0x48] sm:$0xff]  ;;  %v5464_v50 = vand.u32 4294901760, %v2210_v46 }
  0x4c   :  { %4738 = vmatprep.subr.mxu0 %v5204_v15  ;;  %4732 = vmatpush3.msra.mxu1 %v5183_v4  ;;  %v5458_v47 = vand.u32 4294901760, %v2198_v43 }
  0x4d   :  { %4733 = vmatprep.mubr.f32.mxu1 %v678_v44  ;;  %4739 = vmatpush3.msra.mxu0 %v5204_v15  ;;  %v1224_v15 = vsub.f32 %v5322_v5, %v1223_v10  ;;  %v2207_v44 = vsel %vm67_vm0, %v2204_v40, 0  ;;  %v5486_v55 = vsub.f32 %v2210_v46, %v5464_v50 }
  0x4e   :  { %4734 = vmatmul.mubr.f32.vlgmr.msra.gmra.mxu1 %v688_v45  ;;  %4740 = vmatprep.subr.mxu0 %v5208_v17  ;;  %v5451_v45 = vand.u32 4294901760, %v2199_v41  ;;  %v5460_v49 = vand.u32 4294901760, %v2207_v44  ;;  %v5481_v54 = vsub.f32 %v2198_v43, %v5458_v47 }
  0x4f   :  { %4745 = vmatprep.subr.mxu1 %v5229_v36  ;;  %4741 = vmatpush3.msra.mxu0 %v5208_v17  ;;  %v1275_v17 = vsub.f32 %v1273_v7, %v5349_v12 }
  0x50   :  { %4742 = vmatprep.mubr.f32.mxu0 %v5234_v38  ;;  %4746 = vmatpush3.msra.mxu1 %v5229_v36  ;;  %v1758_v36 = vsub.f32 %v5407_v30, %v1757_v33  ;;  %v5469_v51 = vsub.f32 %v2199_v41, %v5451_v45  ;;  %v5478_v53 = vsub.f32 %v2207_v44, %v5460_v49 }
  0x51   :  { %4743 = vmatmul.mubr.f32.vlgmr.msra.gmra.mxu0 %v5238_v39  ;;  %4747 = vmatprep.subr.mxu1 %v5181_v3 }
  0x52   :  { %4754 = vmatprep.subr.mxu0 %v5287_v57  ;;  %4748 = vmatpush3.msra.mxu1 %v5181_v3  ;;  %v1225_v3 = vand.u32 4294901760, %v1224_v15  ;;  %v5491_v56 = vand.u32 4294901760, %v5469_v51  ;;  %v2282_v60 = vand.u32 4294901760, %v5478_v53 }
  0x53   :  { %4755 = vmatpush3.msra.mxu0 %v5287_v57  ;;  %4749 = vmatprep.subr.mxu1 %v5183_v4 }
  0x54   :  { %4756 = vmatprep.subr.mxu0 %v5294_v59  ;;  %4750 = vmatpush3.msra.mxu1 %v5183_v4  ;;  %v1276_v4 = vand.u32 4294901760, %v1275_v17 }
  0x55   :  { %4751 = vmatprep.mubr.f32.mxu1 %v5234_v38  ;;  %4757 = vmatpush3.msra.mxu0 %v5294_v59  ;;  %v1749_v38 = vand.u32 4294901760, %v1748_v35 }
  0x56   :  { %4752 = vmatmul.mubr.f32.vlgmr.msra.gmra.mxu1 %v5238_v39  ;;  %4758 = vmatprep.subr.mxu0 %v5309_v0  ;;  %v1759_v39 = vand.u32 4294901760, %v1758_v36  ;;  %v3266_v36 = vld [vmem:[#allocation6 + $0x60] sm:$0xff] }
  0x57   :  { %4763 = vmatprep.subr.mxu1 %v5365_v16  ;;  %4759 = vmatpush3.msra.mxu0 %v5309_v0  ;;  %v5637_v40 = vand.u32 4294901760, %v3266_v36 }
  0x58   :  { %4764 = vmatpush3.msra.mxu1 %v5365_v16  ;;  %4760 = vmatprep.mubr.f32.mxu0 %v1215_v18  ;;  %v2862_v18 = vsub.f32 %v2733_v11, %v5549_v14 }
  0x59   :  { %4765 = vmatprep.subr.mxu1 %v5372_v19  ;;  %4772 = vmatprep.subr.mxu0 %v5305_v63  ;;  %v3411_v46 = vsub.f32 %v3266_v36, %v5637_v40 }
  0x5a   :  { %4761 = vmatmul.mubr.f32.vlgmr.msra.gmra.mxu0 %v1225_v3  ;;  %4766 = vmatpush3.msra.mxu1 %v5372_v19  ;;  %v5575_v20 = vand.u32 4294901760, %v2862_v18 }
  0x5b   :  { %4773 = vmatpush3.msra.mxu0 %v5305_v63  ;;  %4767 = vmatprep.subr.mxu1 %v1276_v4 }
  0x5c   :  { %4774 = vmatprep.subr.mxu0 %v5317_v2  ;;  %4768 = vmatpush3.msra.mxu1 %v1276_v4  ;;  %v2864_v22 = vsub.f32 %v2862_v18, %v5575_v20 }
  0x5d   :  { %4769 = vmatprep.mubr.f32.mxu1 %v5296_v61  ;;  %4775 = vmatpush3.msra.mxu0 %v5317_v2 }
  0x5e   :  { %4770 = vmatmul.mubr.f32.vlgmr.msra.gmra.mxu1 %v5300_v62  ;;  %4776 = vmatprep.subr.mxu0 %v1273_v7  ;;  %v2865_v25 = vand.u32 4294901760, %v2864_v22 }
  0x5f   :  { %4781 = vmatprep.subr.mxu1 %v5287_v57  ;;  %4777 = vmatpush3.msra.mxu0 %v1273_v7 }
  0x60   :  { %4778 = vmatprep.mubr.f32.mxu0 %v5314_v1  ;;  %4782 = vmatpush3.msra.mxu1 %v5287_v57  ;;  %v2283_v1 = vsub.f32 %v5478_v53, %v2282_v60 }
  0x61   :  { %4779 = vmatmul.mubr.f32.vlgmr.msra.gmra.mxu0 %v5322_v5  ;;  %4783 = vmatprep.subr.mxu1 %v5294_v59 }
  0x62   :  { %4790 = vmatprep.subr.mxu0 %v5327_v6  ;;  %4784 = vmatpush3.msra.mxu1 %v5294_v59 }
  0x63   :  { %4791 = vmatpush3.msra.mxu0 %v5327_v6  ;;  %4785 = vmatprep.subr.mxu1 %v5309_v0 }
  0x64   :  { %4792 = vmatprep.subr.mxu0 %v5337_v9  ;;  %4786 = vmatpush3.msra.mxu1 %v5309_v0 }
  0x65   :  { %4787 = vmatprep.mubr.f32.mxu1 %v1213_v8  ;;  %4793 = vmatpush3.msra.mxu0 %v5337_v9  ;;  %v2284_v8 = vand.u32 4294901760, %v2283_v1 }
  0x66   :  { %4788 = vmatmul.mubr.f32.vlgmr.msra.gmra.mxu1 %v1223_v10  ;;  %4794 = vmatprep.subr.mxu0 %v5349_v12  ;;  %v2738_v10 = vld [vmem:[#allocation3 + $0x50] sm:$0xff] }
  0x67   :  { %4799 = vmatprep.subr.mxu1 %v5287_v57  ;;  %4795 = vmatpush3.msra.mxu0 %v5349_v12  ;;  %v2739_v12 = vld [vmem:[#allocation3 + $0x58] sm:$0xff]  ;;  %v2741_v13 = vsel %vm67_vm0, %v2738_v10, 0 }
  0x68   :  { %4796 = vmatprep.mubr.f32.mxu0 %v5296_v61  ;;  %4800 = vmatpush3.msra.mxu1 %v5287_v57  ;;  %v2744_v15 = vsel %vm67_vm0, %v2739_v12, 0 }
  0x69   :  { %4797 = vmatmul.mubr.f32.vlgmr.msra.gmra.mxu0 %v5300_v62  ;;  %4801 = vmatprep.subr.mxu1 %v5294_v59  ;;  %v5558_v17 = vand.u32 4294901760, %v2744_v15 }
  0x6a   :  { %4808 = vmatprep.subr.mxu0 %v5385_v24  ;;  %4802 = vmatpush3.msra.mxu1 %v5294_v59 }
  0x6b   :  { %4809 = vmatpush3.msra.mxu0 %v5385_v24  ;;  %4803 = vmatprep.subr.mxu1 %v5309_v0  ;;  %v5571_v3 = vsub.f32 %v2744_v15, %v5558_v17 }
  0x6c   :  { %4810 = vmatprep.subr.mxu0 %v5287_v57  ;;  %4804 = vmatpush3.msra.mxu1 %v5309_v0  ;;  %v5513_v0 = vand.u32 4294901760, %v2342_v58 }
  0x6d   :  { %4805 = vmatprep.mubr.f32.mxu1 %v5296_v61  ;;  %4811 = vmatpush3.msra.mxu0 %v5287_v57  ;;  %v5501_v61 = vand.u32 4294901760, %v5481_v54  ;;  %v2826_v21 = vand.u32 4294901760, %v5571_v3 }
  0x6e   :  { %4806 = vmatmul.mubr.f32.vlgmr.msra.gmra.mxu1 %v5300_v62  ;;  %4812 = vmatprep.subr.mxu0 %v5294_v59  ;;  %v2292_v62 = vand.u32 4294901760, %v5486_v55  ;;  %v2344_v7 = vsub.f32 %v2342_v58, %v5513_v0 }
  0x6f   :  { %4817 = vmatprep.subr.mxu1 %v1796_v37  ;;  %4813 = vmatpush3.msra.mxu0 %v5294_v59 }
  0x70   :  { %4818 = vmatpush3.msra.mxu1 %v1796_v37  ;;  %4814 = vmatprep.mubr.f32.mxu0 %v1749_v38  ;;  %v2293_v5 = vsub.f32 %v5486_v55, %v2292_v62 }
  0x71   :  { %4819 = vmatprep.subr.mxu1 %v5365_v16  ;;  %4826 = vmatprep.subr.mxu0 %v1793_v28 }
  0x72   :  { %4815 = vmatmul.mubr.f32.vlgmr.msra.gmra.mxu0 %v1759_v39  ;;  %4820 = vmatpush3.msra.mxu1 %v5365_v16  ;;  %v5554_v16 = vand.u32 4294901760, %v2741_v13 }
  0x73   :  { %4827 = vmatpush3.msra.mxu0 %v1793_v28  ;;  %4821 = vmatprep.subr.mxu1 %v5372_v19  ;;  %v3273_v28 = vld [vmem:[#allocation3 + $0x60] sm:$0xff] }
  0x74   :  { %4828 = vmatprep.subr.mxu0 %v5305_v63  ;;  %4822 = vmatpush3.msra.mxu1 %v5372_v19  ;;  %v5566_v19 = vsub.f32 %v2741_v13, %v5554_v16 }
  0x75   :  { %4823 = vmatprep.mubr.f32.mxu1 %v5390_v26  ;;  %4829 = vmatpush3.msra.mxu0 %v5305_v63  ;;  %v2330_v63 = vsub.f32 %v5469_v51, %v5491_v56 }
  0x76   :  { %4824 = vmatmul.mubr.f32.vlgmr.msra.gmra.mxu1 %v5394_v27  ;;  %4830 = vmatprep.subr.mxu0 %v5317_v2  ;;  %v2816_v4 = vand.u32 4294901760, %v5566_v19 }
  0x77   :  { %4835 = vmatprep.subr.mxu1 %v5385_v24  ;;  %4831 = vmatpush3.msra.mxu0 %v5317_v2  ;;  %v2337_v2 = vsub.f32 %v5481_v54, %v5501_v61 }
  0x78   :  { %4832 = vmatprep.mubr.f32.mxu0 %v5402_v29  ;;  %4836 = vmatpush3.msra.mxu1 %v5385_v24  ;;  %v2817_v23 = vsub.f32 %v5566_v19, %v2816_v4  ;;  %v3268_v29 = vld [vmem:[#allocation6 + $0x70] sm:$0xff] }
  0x79   :  { %4833 = vmatmul.mubr.f32.vlgmr.msra.gmra.mxu0 %v5407_v30  ;;  %4837 = vmatprep.subr.mxu1 %v5287_v57  ;;  %v3274_v30 = vld [vmem:[#allocation3 + $0x68] sm:$0xff] }
  0x7a   :  { %4844 = vmatprep.subr.mxu0 %v5411_v31  ;;  %4838 = vmatpush3.msra.mxu1 %v5287_v57  ;;  %v3279_v34 = vsel %vm67_vm0, %v3274_v30, 0 }
  0x7b   :  { %4845 = vmatpush3.msra.mxu0 %v5411_v31  ;;  %4839 = vmatprep.subr.mxu1 %v5294_v59  ;;  %v3267_v31 = vld [vmem:[#allocation6 + $0x68] sm:$0xff]  ;;  %v5628_v38 = vand.u32 4294901760, %v3279_v34 }
  0x7c   :  { %4846 = vmatprep.subr.mxu0 %v5327_v6  ;;  %4840 = vmatpush3.msra.mxu1 %v5294_v59  ;;  %v5622_v35 = vand.u32 4294901760, %v3267_v31 }
  0x7d   :  { %4841 = vmatprep.mubr.f32.mxu1 %v1747_v32  ;;  %4847 = vmatpush3.msra.mxu0 %v5327_v6  ;;  %v5529_v6 = vand.u32 4294901760, %v2330_v63  ;;  %v3276_v32 = vsel %vm67_vm0, %v3273_v28, 0  ;;  %v5650_v43 = vsub.f32 %v3279_v34, %v5628_v38  ;;  %v3802_v63 = vld [vmem:[#allocation6 + $0x78] sm:$0xff] }
  0x7e   :  { %4842 = vmatmul.mubr.f32.vlgmr.msra.gmra.mxu1 %v1757_v33  ;;  %4848 = vmatprep.subr.mxu0 %v5337_v9  ;;  %v5615_v33 = vand.u32 4294901760, %v3268_v29  ;;  %v5624_v37 = vand.u32 4294901760, %v3276_v32  ;;  %v5645_v42 = vsub.f32 %v3267_v31, %v5622_v35 }
  0x7f   :  { %4853 = vmatprep.subr.mxu1 %v5385_v24  ;;  %4849 = vmatpush3.msra.mxu0 %v5337_v9  ;;  %v5536_v9 = vand.u32 4294901760, %v2337_v2  ;;  %v5713_v2 = vand.u32 4294901760, %v3802_v63 }
  0x80   :  { %4850 = vmatprep.mubr.f32.mxu0 %v5390_v26  ;;  %4854 = vmatpush3.msra.mxu1 %v5385_v24  ;;  %v2827_v24 = vsub.f32 %v5571_v3, %v2826_v21  ;;  %v5633_v39 = vsub.f32 %v3268_v29, %v5615_v33  ;;  %v5642_v41 = vsub.f32 %v3276_v32, %v5624_v37 }
  0x81   :  { %4851 = vmatmul.mubr.f32.vlgmr.msra.gmra.mxu0 %v5394_v27  ;;  %4855 = vmatprep.subr.mxu1 %v5287_v57 }
  0x82   :  { %4862 = vmatprep.subr.mxu0 %v5451_v45  ;;  %4856 = vmatpush3.msra.mxu1 %v5287_v57  ;;  %v2294_v57 = vand.u32 4294901760, %v2293_v5  ;;  %v5655_v44 = vand.u32 4294901760, %v5633_v39  ;;  %v3351_v48 = vand.u32 4294901760, %v5642_v41 }
  0x83   :  { %4863 = vmatpush3.msra.mxu0 %v5451_v45  ;;  %4857 = vmatprep.subr.mxu1 %v5294_v59 }
  0x84   :  { %4864 = vmatprep.subr.mxu0 %v5458_v47  ;;  %4858 = vmatpush3.msra.mxu1 %v5294_v59  ;;  %v2345_v59 = vand.u32 4294901760, %v2344_v7 }
  0x85   :  { %4859 = vmatprep.mubr.f32.mxu1 %v5390_v26  ;;  %4865 = vmatpush3.msra.mxu0 %v5458_v47  ;;  %v2818_v26 = vand.u32 4294901760, %v2817_v23 }
  0x86   :  { %4860 = vmatmul.mubr.f32.vlgmr.msra.gmra.mxu1 %v5394_v27  ;;  %4866 = vmatprep.subr.mxu0 %v5473_v52  ;;  %v2828_v27 = vand.u32 4294901760, %v2827_v24 }
  0x87   :  { %4871 = vmatprep.subr.mxu1 %v5529_v6  ;;  %4867 = vmatpush3.msra.mxu0 %v5473_v52 }
  0x88   :  { %4872 = vmatpush3.msra.mxu1 %v5529_v6  ;;  %4868 = vmatprep.mubr.f32.mxu0 %v2284_v8  ;;  %v3931_v8 = vsub.f32 %v3802_v63, %v5713_v2 }
  0x89   :  { %4873 = vmatprep.subr.mxu1 %v5536_v9  ;;  %4880 = vmatprep.subr.mxu0 %v5469_v51 }
  0x8a   :  { %4869 = vmatmul.mubr.f32.vlgmr.msra.gmra.mxu0 %v2294_v57  ;;  %4874 = vmatpush3.msra.mxu1 %v5536_v9  ;;  %v3932_v10 = vand.u32 4294901760, %v3931_v8 }
  0x8b   :  { %4881 = vmatpush3.msra.mxu0 %v5469_v51  ;;  %4875 = vmatprep.subr.mxu1 %v2345_v59 }
  0x8c   :  { %4882 = vmatprep.subr.mxu0 %v5481_v54  ;;  %4876 = vmatpush3.msra.mxu1 %v2345_v59  ;;  %v3933_v12 = vsub.f32 %v3931_v8, %v3932_v10 }
  0x8d   :  { %4877 = vmatprep.mubr.f32.mxu1 %v5460_v49  ;;  %4883 = vmatpush3.msra.mxu0 %v5481_v54 }
  0x8e   :  { %4878 = vmatmul.mubr.f32.vlgmr.msra.gmra.mxu1 %v5464_v50  ;;  %4884 = vmatprep.subr.mxu0 %v2342_v58  ;;  %v3934_v15 = vand.u32 4294901760, %v3933_v12 }
  0x8f   :  { %4889 = vmatprep.subr.mxu1 %v5451_v45  ;;  %4885 = vmatpush3.msra.mxu0 %v2342_v58 }
  0x90   :  { %4886 = vmatprep.mubr.f32.mxu0 %v5478_v53  ;;  %4890 = vmatpush3.msra.mxu1 %v5451_v45  ;;  %v3352_v53 = vsub.f32 %v5642_v41, %v3351_v48 }
  0x91   :  { %4887 = vmatmul.mubr.f32.vlgmr.msra.gmra.mxu0 %v5486_v55  ;;  %4891 = vmatprep.subr.mxu1 %v5458_v47 }
  0x92   :  { %4898 = vmatprep.subr.mxu0 %v5491_v56  ;;  %4892 = vmatpush3.msra.mxu1 %v5458_v47 }
  0x93   :  { %4899 = vmatpush3.msra.mxu0 %v5491_v56  ;;  %4893 = vmatprep.subr.mxu1 %v5473_v52 }
  0x94   :  { %4900 = vmatprep.subr.mxu0 %v5501_v61  ;;  %4894 = vmatpush3.msra.mxu1 %v5473_v52 }
  0x95   :  { %4895 = vmatprep.mubr.f32.mxu1 %v2282_v60  ;;  %4901 = vmatpush3.msra.mxu0 %v5501_v61  ;;  %v3353_v60 = vand.u32 4294901760, %v3352_v53 }
  0x96   :  { %4896 = vmatmul.mubr.f32.vlgmr.msra.gmra.mxu1 %v2292_v62  ;;  %4902 = vmatprep.subr.mxu0 %v5513_v0  ;;  %v3807_v62 = vld [vmem:[#allocation3 + $0x70] sm:$0xff] }
  0x97   :  { %4907 = vmatprep.subr.mxu1 %v5451_v45  ;;  %4903 = vmatpush3.msra.mxu0 %v5513_v0  ;;  %v3808_v0 = vld [vmem:[#allocation3 + $0x78] sm:$0xff]  ;;  %v3810_v1 = vsel %vm67_vm0, %v3807_v62, 0 }
  0x98   :  { %4904 = vmatprep.mubr.f32.mxu0 %v5460_v49  ;;  %4908 = vmatpush3.msra.mxu1 %v5451_v45  ;;  %v3813_v5 = vsel %vm67_vm0, %v3808_v0, 0 }
  0x99   :  { %4905 = vmatmul.mubr.f32.vlgmr.msra.gmra.mxu0 %v5464_v50  ;;  %4909 = vmatprep.subr.mxu1 %v5458_v47  ;;  %v5722_v7 = vand.u32 4294901760, %v3813_v5 }
  0x9a   :  { %4916 = vmatprep.subr.mxu0 %v5549_v14  ;;  %4910 = vmatpush3.msra.mxu1 %v5458_v47 }
  0x9b   :  { %4917 = vmatpush3.msra.mxu0 %v5549_v14  ;;  %4911 = vmatprep.subr.mxu1 %v5473_v52  ;;  %v5735_v57 = vsub.f32 %v3813_v5, %v5722_v7 }
  0x9c   :  { %4918 = vmatprep.subr.mxu0 %v5451_v45  ;;  %4912 = vmatpush3.msra.mxu1 %v5473_v52  ;;  %v5677_v52 = vand.u32 4294901760, %v3411_v46 }
  0x9d   :  { %4913 = vmatprep.mubr.f32.mxu1 %v5460_v49  ;;  %4919 = vmatpush3.msra.mxu0 %v5451_v45  ;;  %v5665_v49 = vand.u32 4294901760, %v5645_v42  ;;  %v3895_v11 = vand.u32 4294901760, %v5735_v57 }
  0x9e   :  { %4914 = vmatmul.mubr.f32.vlgmr.msra.gmra.mxu1 %v5464_v50  ;;  %4920 = vmatprep.subr.mxu0 %v5458_v47  ;;  %v3361_v50 = vand.u32 4294901760, %v5650_v43  ;;  %v3413_v58 = vsub.f32 %v3411_v46, %v5677_v52 }
  0x9f   :  { %4925 = vmatprep.subr.mxu1 %v2865_v25  ;;  %4921 = vmatpush3.msra.mxu0 %v5458_v47 }
  0xa0   :  { %4926 = vmatpush3.msra.mxu1 %v2865_v25  ;;  %4922 = vmatprep.mubr.f32.mxu0 %v2818_v26  ;;  %v3362_v55 = vsub.f32 %v5650_v43, %v3361_v50 }
  0xa1   :  { %4927 = vmatprep.subr.mxu1 %v5529_v6  ;;  %4934 = vmatprep.subr.mxu0 %v2862_v18 }
  0xa2   :  { %4923 = vmatmul.mubr.f32.vlgmr.msra.gmra.mxu0 %v2828_v27  ;;  %4928 = vmatpush3.msra.mxu1 %v5529_v6  ;;  %v5718_v6 = vand.u32 4294901760, %v3810_v1 }
  0xa3   :  { %4935 = vmatpush3.msra.mxu0 %v2862_v18  ;;  %4929 = vmatprep.subr.mxu1 %v5536_v9 }
  0xa4   :  { %4936 = vmatprep.subr.mxu0 %v5469_v51  ;;  %4930 = vmatpush3.msra.mxu1 %v5536_v9  ;;  %v5730_v9 = vsub.f32 %v3810_v1, %v5718_v6 }
  0xa5   :  { %4931 = vmatprep.mubr.f32.mxu1 %v5554_v16  ;;  %4937 = vmatpush3.msra.mxu0 %v5469_v51  ;;  %v3399_v51 = vsub.f32 %v5633_v39, %v5655_v44 }
  0xa6   :  { %4932 = vmatmul.mubr.f32.vlgmr.msra.gmra.mxu1 %v5558_v17  ;;  %4938 = vmatprep.subr.mxu0 %v5481_v54  ;;  %v3885_v59 = vand.u32 4294901760, %v5730_v9 }
  0xa7   :  { %4943 = vmatprep.subr.mxu1 %v5549_v14  ;;  %4939 = vmatpush3.msra.mxu0 %v5481_v54  ;;  %v3406_v54 = vsub.f32 %v5645_v42, %v5665_v49 }
  0xa8   :  { %4940 = vmatprep.mubr.f32.mxu0 %v5566_v19  ;;  %4944 = vmatpush3.msra.mxu1 %v5549_v14  ;;  %v3886_v13 = vsub.f32 %v5730_v9, %v3885_v59 }
  0xa9   :  { %4941 = vmatmul.mubr.f32.vlgmr.msra.gmra.mxu0 %v5571_v3  ;;  %4945 = vmatprep.subr.mxu1 %v5451_v45 }
  0xaa   :  { %4952 = vmatprep.subr.mxu0 %v5575_v20  ;;  %4946 = vmatpush3.msra.mxu1 %v5451_v45 }
  0xab   :  { %4953 = vmatpush3.msra.mxu0 %v5575_v20  ;;  %4947 = vmatprep.subr.mxu1 %v5458_v47 }
  0xac   :  { %4954 = vmatprep.subr.mxu0 %v5491_v56  ;;  %4948 = vmatpush3.msra.mxu1 %v5458_v47 }
  0xad   :  { %4949 = vmatprep.mubr.f32.mxu1 %v2816_v4  ;;  %4955 = vmatpush3.msra.mxu0 %v5491_v56  ;;  %v5693_v56 = vand.u32 4294901760, %v3399_v51 }
  0xae   :  { %4950 = vmatmul.mubr.f32.vlgmr.msra.gmra.mxu1 %v2826_v21  ;;  %4956 = vmatprep.subr.mxu0 %v5501_v61 }
  0xaf   :  { %4961 = vmatprep.subr.mxu1 %v5549_v14  ;;  %4957 = vmatpush3.msra.mxu0 %v5501_v61  ;;  %v5700_v61 = vand.u32 4294901760, %v3406_v54 }
  0xb0   :  { %4958 = vmatprep.mubr.f32.mxu0 %v5554_v16  ;;  %4962 = vmatpush3.msra.mxu1 %v5549_v14  ;;  %v3896_v14 = vsub.f32 %v5735_v57, %v3895_v11 }
  0xb1   :  { %4959 = vmatmul.mubr.f32.vlgmr.msra.gmra.mxu0 %v5558_v17  ;;  %4963 = vmatprep.subr.mxu1 %v5451_v45 }
  0xb2   :  { %4970 = vmatprep.subr.mxu0 %v5615_v33  ;;  %4964 = vmatpush3.msra.mxu1 %v5451_v45  ;;  %v3363_v45 = vand.u32 4294901760, %v3362_v55 }
  0xb3   :  { %4971 = vmatpush3.msra.mxu0 %v5615_v33  ;;  %4965 = vmatprep.subr.mxu1 %v5458_v47 }
  0xb4   :  { %4972 = vmatprep.subr.mxu0 %v5622_v35  ;;  %4966 = vmatpush3.msra.mxu1 %v5458_v47  ;;  %v3414_v47 = vand.u32 4294901760, %v3413_v58 }
  0xb5   :  { %4967 = vmatprep.mubr.f32.mxu1 %v5554_v16  ;;  %4973 = vmatpush3.msra.mxu0 %v5622_v35  ;;  %v3887_v16 = vand.u32 4294901760, %v3886_v13 }
  0xb6   :  { %4968 = vmatmul.mubr.f32.vlgmr.msra.gmra.mxu1 %v5558_v17  ;;  %4974 = vmatprep.subr.mxu0 %v5637_v40  ;;  %v3897_v17 = vand.u32 4294901760, %v3896_v14 }
  0xb7   :  { %4979 = vmatprep.subr.mxu1 %v5693_v56  ;;  %4975 = vmatpush3.msra.mxu0 %v5637_v40 }
  0xb8   :  { %4980 = vmatpush3.msra.mxu1 %v5693_v56  ;;  %4976 = vmatprep.mubr.f32.mxu0 %v3353_v60 }
  0xb9   :  { %4981 = vmatprep.subr.mxu1 %v5700_v61  ;;  %4988 = vmatprep.subr.mxu0 %v5633_v39 }
  0xba   :  { %4977 = vmatmul.mubr.f32.vlgmr.msra.gmra.mxu0 %v3363_v45  ;;  %4982 = vmatpush3.msra.mxu1 %v5700_v61 }
  0xbb   :  { %4989 = vmatpush3.msra.mxu0 %v5633_v39  ;;  %4983 = vmatprep.subr.mxu1 %v3414_v47 }
  0xbc   :  { %4990 = vmatprep.subr.mxu0 %v5645_v42  ;;  %4984 = vmatpush3.msra.mxu1 %v3414_v47 }
  0xbd   :  { %4985 = vmatprep.mubr.f32.mxu1 %v5624_v37  ;;  %4991 = vmatpush3.msra.mxu0 %v5645_v42 }
  0xbe   :  { %4986 = vmatmul.mubr.f32.vlgmr.msra.gmra.mxu1 %v5628_v38  ;;  %4992 = vmatprep.subr.mxu0 %v3411_v46 }
  0xbf   :  { %4997 = vmatprep.subr.mxu1 %v5615_v33  ;;  %4993 = vmatpush3.msra.mxu0 %v3411_v46 }
  0xc0   :  { %4994 = vmatprep.mubr.f32.mxu0 %v5642_v41  ;;  %4998 = vmatpush3.msra.mxu1 %v5615_v33 }
  0xc1   :  { %4995 = vmatmul.mubr.f32.vlgmr.msra.gmra.mxu0 %v5650_v43  ;;  %4999 = vmatprep.subr.mxu1 %v5622_v35 }
  0xc2   :  { %5006 = vmatprep.subr.mxu0 %v5655_v44  ;;  %5000 = vmatpush3.msra.mxu1 %v5622_v35 }
  0xc3   :  { %5007 = vmatpush3.msra.mxu0 %v5655_v44  ;;  %5001 = vmatprep.subr.mxu1 %v5637_v40 }
  0xc4   :  { %5008 = vmatprep.subr.mxu0 %v5665_v49  ;;  %5002 = vmatpush3.msra.mxu1 %v5637_v40 }
  0xc5   :  { %5003 = vmatprep.mubr.f32.mxu1 %v3351_v48  ;;  %5009 = vmatpush3.msra.mxu0 %v5665_v49 }
  0xc6   :  { %5004 = vmatmul.mubr.f32.vlgmr.msra.gmra.mxu1 %v3361_v50  ;;  %5010 = vmatprep.subr.mxu0 %v5677_v52 }
  0xc7   :  { %5015 = vmatprep.subr.mxu1 %v5615_v33  ;;  %5011 = vmatpush3.msra.mxu0 %v5677_v52 }
  0xc8   :  { %5012 = vmatprep.mubr.f32.mxu0 %v5624_v37  ;;  %5016 = vmatpush3.msra.mxu1 %v5615_v33 }
  0xc9   :  { %5013 = vmatmul.mubr.f32.vlgmr.msra.gmra.mxu0 %v5628_v38  ;;  %5017 = vmatprep.subr.mxu1 %v5622_v35 }
  0xca   :  { %5024 = vmatprep.subr.mxu0 %v5713_v2  ;;  %5018 = vmatpush3.msra.mxu1 %v5622_v35 }
  0xcb   :  { %5025 = vmatpush3.msra.mxu0 %v5713_v2  ;;  %5019 = vmatprep.subr.mxu1 %v5637_v40 }
  0xcc   :  { %5026 = vmatprep.subr.mxu0 %v5615_v33  ;;  %5020 = vmatpush3.msra.mxu1 %v5637_v40 }
  0xcd   :  { %5021 = vmatprep.mubr.f32.mxu1 %v5624_v37  ;;  %5027 = vmatpush3.msra.mxu0 %v5615_v33 }
  0xce   :  { %5022 = vmatmul.mubr.f32.vlgmr.msra.gmra.mxu1 %v5628_v38  ;;  %5028 = vmatprep.subr.mxu0 %v5622_v35 }
  0xcf   :  { %5033 = vmatprep.subr.mxu1 %v3934_v15  ;;  %5029 = vmatpush3.msra.mxu0 %v5622_v35 }
  0xd0   :  { %5034 = vmatpush3.msra.mxu1 %v3934_v15  ;;  %5030 = vmatprep.mubr.f32.mxu0 %v3887_v16 }
  0xd1   :  { %5035 = vmatprep.subr.mxu1 %v5693_v56  ;;  %5042 = vmatprep.subr.mxu0 %v3931_v8 }
  0xd2   :  { %5031 = vmatmul.mubr.f32.vlgmr.msra.gmra.mxu0 %v3897_v17  ;;  %5036 = vmatpush3.msra.mxu1 %v5693_v56 }
  0xd3   :  { %5043 = vmatpush3.msra.mxu0 %v3931_v8  ;;  %5037 = vmatprep.subr.mxu1 %v5700_v61 }
  0xd4   :  { %5044 = vmatprep.subr.mxu0 %v5633_v39  ;;  %5038 = vmatpush3.msra.mxu1 %v5700_v61 }
  0xd5   :  { %5039 = vmatprep.mubr.f32.mxu1 %v5718_v6  ;;  %5045 = vmatpush3.msra.mxu0 %v5633_v39 }
  0xd6   :  { %5040 = vmatmul.mubr.f32.vlgmr.msra.gmra.mxu1 %v5722_v7  ;;  %5046 = vmatprep.subr.mxu0 %v5645_v42 }
  0xd7   :  { %5051 = vmatprep.subr.mxu1 %v5713_v2  ;;  %5047 = vmatpush3.msra.mxu0 %v5645_v42 }
  0xd8   :  { %5048 = vmatprep.mubr.f32.mxu0 %v5730_v9  ;;  %5052 = vmatpush3.msra.mxu1 %v5713_v2 }
  0xd9   :  { %5049 = vmatmul.mubr.f32.vlgmr.msra.gmra.mxu0 %v5735_v57  ;;  %5053 = vmatprep.subr.mxu1 %v5615_v33 }
  0xda   :  { %5060 = vmatprep.subr.mxu0 %v3932_v10  ;;  %5054 = vmatpush3.msra.mxu1 %v5615_v33 }
  0xdb   :  { %5061 = vmatpush3.msra.mxu0 %v3932_v10  ;;  %5055 = vmatprep.subr.mxu1 %v5622_v35 }
  0xdc   :  { %5062 = vmatprep.subr.mxu0 %v5655_v44  ;;  %5056 = vmatpush3.msra.mxu1 %v5622_v35 }
  0xdd   :  { %5057 = vmatprep.mubr.f32.mxu1 %v3885_v59  ;;  %5063 = vmatpush3.msra.mxu0 %v5655_v44 }
  0xde   :  { %5058 = vmatmul.mubr.f32.vlgmr.msra.gmra.mxu1 %v3895_v11  ;;  %5064 = vmatprep.subr.mxu0 %v5665_v49 }
  0xdf   :  { %5069 = vmatprep.subr.mxu1 %v5713_v2  ;;  %5065 = vmatpush3.msra.mxu0 %v5665_v49 }
  0xe0   :  { %5066 = vmatprep.mubr.f32.mxu0 %v5718_v6  ;;  %5070 = vmatpush3.msra.mxu1 %v5713_v2 }
  0xe1   :  { %5067 = vmatmul.mubr.f32.vlgmr.msra.gmra.mxu0 %v5722_v7  ;;  %5071 = vmatprep.subr.mxu1 %v5615_v33 }
  0xe2   :  { %5075 = vmatprep.mubr.f32.mxu1 %v5718_v6  ;;  %5072 = vmatpush3.msra.mxu1 %v5615_v33 }
  0xe3   :  { %5073 = vmatprep.subr.mxu1 %v5622_v35 }
  0xe4   :  { %5074 = vmatpush3.msra.mxu1 %v5622_v35 }
  0xe5   :  { %5076 = vmatmul.mubr.f32.vlgmr.msra.gmra.mxu1 %v5722_v7 }
  0xeb   :  { %v4654_v18 = vpop.f32.mrf.mxu0 }
  0xed   :  { %v148_v19 = vpop.f32.mrf.mxu0  ;;  %v4663_v20 = vpop.f32.mrf.mxu1 }
  0xee   :  { %v251_v8 = vadd.f32 %v4663_v20, %v4654_v18 }
  0xef   :  { %v244_v22 = vpop.f32.mrf.mxu1 }
  0xf0   :  { %v245_v59 = vadd.f32 %v244_v22, %v148_v19 }
  0xf1   :  { %v4672_v3 = vpop.f32.mrf.mxu0 }
  0xf2   :  { %v336_v13 = vadd.f32 %v4672_v3, %v251_v8 }
  0xf3   :  { %v328_v4 = vpop.f32.mrf.mxu0 }
  0xf6   :  { %v4681_v23 = vpop.f32.mrf.mxu1 }
  0xf8   :  { %v411_v26 = vpop.f32.mrf.mxu1 }
  0xf9   :  { %v5801_v21 = vpop.f32.mrf.mxu0 }
  0xfb   :  { %v5803_v24 = vpop.f32.mrf.mxu0 }
  0xfe   :  { %v5807_v27 = vpop.f32.mrf.mxu1 }
 0x100   :  { %v5811_v29 = vpop.f32.mrf.mxu1 }
 0x102   :  { %v5805_v25 = vpop.f32.mrf.mxu0 }
 0x104   :  { %v5809_v28 = vpop.f32.mrf.mxu0 }
 0x106   :  { %v5815_v31 = vpop.f32.mrf.mxu1 }
 0x108   :  { %v5819_v33 = vpop.f32.mrf.mxu1 }
 0x109   :  { %v5813_v30 = vpop.f32.mrf.mxu0 }
 0x10b   :  { %v5817_v32 = vpop.f32.mrf.mxu0 }
 0x10e   :  { %v5823_v35 = vpop.f32.mrf.mxu1 }
 0x110   :  { %v5827_v37 = vpop.f32.mrf.mxu1 }
 0x111   :  { %v5821_v34 = vpop.f32.mrf.mxu0 }
 0x112   :  { %5912 = vst [vmem:[#allocation12_spill] sm:$0xff] %v5821_v34 }
 0x113   :  { %v5825_v36 = vpop.f32.mrf.mxu0 }
 0x114   :  { %5913 = vst [vmem:[#allocation13_spill] sm:$0xff] %v5825_v36  ;;  %v420_v36 = vadd.f32 %v4681_v23, %v336_v13 }
 0x116   :  { %v5829_v39 = vpop.f32.mrf.mxu1  ;;  %v506_v19 = vadd.f32 %v5801_v21, %v420_v36 }
 0x117   :  { %5914 = vst [vmem:[#allocation14_spill] sm:$0xff] %v5829_v39  ;;  %v329_v39 = vadd.f32 %v328_v4, %v245_v59 }
 0x118   :  { %v5831_v41 = vpop.f32.mrf.mxu1  ;;  %v586_v4 = vadd.f32 %v5807_v27, %v506_v19 }
 0x119   :  { %5915 = vst [vmem:[#allocation15_spill] sm:$0xff] %v5831_v41  ;;  %v412_v34 = vadd.f32 %v411_v26, %v329_v39  ;;  %v5919_v59 = vld [vmem:[#allocation12_spill] sm:$0xff] }
 0x11a   :  { %v4762_v38 = vpop.f32.mrf.mxu0 }
 0x11c   :  { %v1217_v40 = vpop.f32.mrf.mxu0 }
 0x11e   :  { %v4771_v42 = vpop.f32.mrf.mxu1 }
 0x11f   :  { %v1320_v7 = vadd.f32 %v4771_v42, %v4762_v38 }
 0x120   :  { %v1313_v44 = vpop.f32.mrf.mxu1 }
 0x121   :  { %v4780_v43 = vpop.f32.mrf.mxu0  ;;  %v1314_v9 = vadd.f32 %v1313_v44, %v1217_v40  ;;  %v500_v44 = vadd.f32 %v5803_v24, %v412_v34 }
 0x122   :  { %v1405_v11 = vadd.f32 %v4780_v43, %v1320_v7 }
 0x123   :  { %v1397_v46 = vpop.f32.mrf.mxu0  ;;  %v580_v26 = vadd.f32 %v5811_v29, %v500_v44 }
 0x124   :  { %v1398_v14 = vadd.f32 %v1397_v46, %v1314_v9 }
 0x126   :  { %v4789_v48 = vpop.f32.mrf.mxu1 }
 0x127   :  { %v1489_v15 = vadd.f32 %v4789_v48, %v1405_v11 }
 0x128   :  { %v1480_v50 = vpop.f32.mrf.mxu1 }
 0x129   :  { %v4798_v49 = vpop.f32.mrf.mxu0 }
 0x12a   :  { %v1575_v38 = vadd.f32 %v4798_v49, %v1489_v15  ;;  %v5922_v15 = vld [vmem:[#allocation13_spill] sm:$0xff] }
 0x12b   :  { %v1568_v51 = vpop.f32.mrf.mxu0 }
 0x12e   :  { %v4807_v52 = vpop.f32.mrf.mxu1 }
 0x12f   :  { %v5854_v42 = vadd.f32 %v4807_v52, %v1575_v38 }
 0x130   :  { %v1648_v54 = vpop.f32.mrf.mxu1 }
 0x131   :  { %v4342_v39 = vadd.f32 %v5854_v42, %v586_v4 }
 0x132   :  { %v5833_v53 = vpop.f32.mrf.mxu0 }
 0x134   :  { %v5835_v55 = vpop.f32.mrf.mxu0 }
 0x136   :  { %v4825_v56 = vpop.f32.mrf.mxu1 }
 0x137   :  { %v1854_v29 = vadd.f32 %v4825_v56, %v5833_v53 }
 0x138   :  { %v1847_v60 = vpop.f32.mrf.mxu1 }
 0x139   :  { %v5837_v58 = vpop.f32.mrf.mxu0 }
 0x13b   :  { %v5839_v61 = vpop.f32.mrf.mxu0 }
 0x13e   :  { %v5841_v45 = vpop.f32.mrf.mxu1 }
 0x140   :  { %v5845_v47 = vpop.f32.mrf.mxu1 }
 0x141   :  { %v5843_v62 = vpop.f32.mrf.mxu0 }
 0x143   :  { %v5847_v63 = vpop.f32.mrf.mxu0 }
 0x144   :  { %5916 = vst [vmem:[#allocation16_spill] sm:$0xff] %v5847_v63 }
 0x146   :  { %v5849_v0 = vpop.f32.mrf.mxu1 }
 0x147   :  { %5917 = vst [vmem:[#allocation17_spill] sm:$0xff] %v5849_v0  ;;  %v1481_v0 = vadd.f32 %v1480_v50, %v1398_v14 }
 0x148   :  { %v5851_v2 = vpop.f32.mrf.mxu1 }
 0x149   :  { %5918 = vst [vmem:[#allocation18_spill] sm:$0xff] %v5851_v2  ;;  %v1569_v22 = vadd.f32 %v1568_v51, %v1481_v0 }
 0x14a   :  { %v4870_v1 = vpop.f32.mrf.mxu0 }
 0x14b   :  { %v5858_v23 = vadd.f32 %v1648_v54, %v1569_v22  ;;  %v785_v54 = vadd.f32 %v5815_v31, %v5805_v25  ;;  %v5920_v11 = vld [vmem:[#allocation16_spill] sm:$0xff] }
 0x14c   :  { %v2286_v5 = vpop.f32.mrf.mxu0 }
 0x14d   :  { %v4341_v36 = vadd.f32 %v5858_v23, %v580_v26  ;;  %v870_v7 = vadd.f32 %v5813_v30, %v785_v54 }
 0x14e   :  { %v4879_v6 = vpop.f32.mrf.mxu1  ;;  %v5921_v13 = vld [vmem:[#allocation17_spill] sm:$0xff] }
 0x14f   :  { %v2389_v12 = vadd.f32 %v4879_v6, %v4870_v1  ;;  %v954_v31 = vadd.f32 %v5823_v35, %v870_v7 }
 0x150   :  { %v2382_v57 = vpop.f32.mrf.mxu1  ;;  %v5924_v38 = vld [vmem:[#allocation18_spill] sm:$0xff] }
 0x151   :  { %v4888_v10 = vpop.f32.mrf.mxu0  ;;  %v2383_v16 = vadd.f32 %v2382_v57, %v2286_v5  ;;  %v1939_v5 = vadd.f32 %v5837_v58, %v1854_v29 }
 0x152   :  { %v2474_v2 = vadd.f32 %v4888_v10, %v2389_v12 }
 0x153   :  { %v2466_v17 = vpop.f32.mrf.mxu0  ;;  %v2023_v9 = vadd.f32 %v5841_v45, %v1939_v5  ;;  %v1040_v45 = vadd.f32 %v5919_v59, %v954_v31 }
 0x154   :  { %v2467_v18 = vadd.f32 %v2466_v17, %v2383_v16  ;;  %v5923_v16 = vld [vmem:[#allocation14_spill] sm:$0xff] }
 0x155   :  { %v2109_v58 = vadd.f32 %v5843_v62, %v2023_v9  ;;  %v1120_v17 = vadd.f32 %v5923_v16, %v1040_v45 }
 0x156   :  { %v4897_v41 = vpop.f32.mrf.mxu1 }
 0x157   :  { %v2558_v20 = vadd.f32 %v4897_v41, %v2474_v2  ;;  %v779_v2 = vadd.f32 %v5819_v33, %v5809_v28  ;;  %v5887_v14 = vadd.f32 %v5921_v13, %v2109_v58 }
 0x158   :  { %v2549_v63 = vpop.f32.mrf.mxu1 }
 0x159   :  { %v4906_v40 = vpop.f32.mrf.mxu0  ;;  %v2550_v3 = vadd.f32 %v2549_v63, %v2467_v18  ;;  %v1848_v63 = vadd.f32 %v1847_v60, %v5835_v55  ;;  %v863_v25 = vadd.f32 %v5817_v32, %v779_v2  ;;  %v4354_v19 = vadd.f32 %v5887_v14, %v1120_v17 }
 0x15a   :  { %v2644_v46 = vadd.f32 %v4906_v40, %v2558_v20  ;;  %v5925_v20 = vld [vmem:[#allocation15_spill] sm:$0xff] }
 0x15b   :  { %v2637_v43 = vpop.f32.mrf.mxu0  ;;  %v1932_v8 = vadd.f32 %v5839_v61, %v1848_v63  ;;  %v946_v33 = vadd.f32 %v5827_v37, %v863_v25 }
 0x15c   :  { %v2638_v41 = vadd.f32 %v2637_v43, %v2550_v3 }
 0x15d   :  { %v2015_v55 = vadd.f32 %v5845_v47, %v1932_v8  ;;  %v1034_v47 = vadd.f32 %v5922_v15, %v946_v33 }
 0x15e   :  { %v4915_v48 = vpop.f32.mrf.mxu1 }
 0x15f   :  { %v5862_v49 = vadd.f32 %v4915_v48, %v2644_v46  ;;  %v2103_v12 = vadd.f32 %v5920_v11, %v2015_v55  ;;  %v1114_v40 = vadd.f32 %v5925_v20, %v1034_v47 }
 0x160   :  { %v2717_v21 = vpop.f32.mrf.mxu1 }
 0x161   :  { %v4346_v50 = vadd.f32 %v4342_v39, %v5862_v49  ;;  %v5866_v51 = vadd.f32 %v2717_v21, %v2638_v41  ;;  %v5892_v37 = vadd.f32 %v5924_v38, %v2103_v12  ;;  %v4367_v7 = vsub.f32 %v5854_v42, %v5862_v49 }
 0x162   :  { %v4924_v24 = vpop.f32.mrf.mxu0 }
 0x163   :  { %4348 = vst [vmem:[#allocation8 + $0x8] sm:$0xff] %v4346_v50  ;;  %v4345_v27 = vadd.f32 %v4341_v36, %v5866_v51  ;;  %v4353_v44 = vadd.f32 %v5892_v37, %v1114_v40 }
 0x164   :  { %v2820_v34 = vpop.f32.mrf.mxu0 }
 0x165   :  { %4347 = vst [vmem:[#allocation8] sm:$0xff] %v4345_v27 }
 0x166   :  { %v4933_v52 = vpop.f32.mrf.mxu1 }
 0x167   :  { %v2923_v6 = vadd.f32 %v4933_v52, %v4924_v24 }
 0x168   :  { %v2916_v0 = vpop.f32.mrf.mxu1 }
 0x169   :  { %v4942_v1 = vpop.f32.mrf.mxu0  ;;  %v2917_v53 = vadd.f32 %v2916_v0, %v2820_v34 }
 0x16a   :  { %v3008_v60 = vadd.f32 %v4942_v1, %v2923_v6 }
 0x16b   :  { %v3000_v56 = vpop.f32.mrf.mxu0 }
 0x16c   :  { %v3001_v30 = vadd.f32 %v3000_v56, %v2917_v53  ;;  %v4366_v56 = vsub.f32 %v5858_v23, %v5866_v51 }
 0x16e   :  { %v4951_v57 = vpop.f32.mrf.mxu1 }
 0x16f   :  { %v3092_v10 = vadd.f32 %v4951_v57, %v3008_v60 }
 0x170   :  { %v3083_v28 = vpop.f32.mrf.mxu1 }
 0x171   :  { %v4960_v61 = vpop.f32.mrf.mxu0  ;;  %v3084_v32 = vadd.f32 %v3083_v28, %v3001_v30 }
 0x172   :  { %v3178_v62 = vadd.f32 %v4960_v61, %v3092_v10 }
 0x173   :  { %v3171_v35 = vpop.f32.mrf.mxu0 }
 0x174   :  { %v3172_v22 = vadd.f32 %v3171_v35, %v3084_v32 }
 0x176   :  { %v4969_v18 = vpop.f32.mrf.mxu1 }
 0x177   :  { %v3258_v3 = vadd.f32 %v4969_v18, %v3178_v62 }
 0x178   :  { %v3251_v43 = vpop.f32.mrf.mxu1 }
 0x179   :  { %v4358_v4 = vadd.f32 %v4354_v19, %v3258_v3  ;;  %v3252_v46 = vadd.f32 %v3251_v43, %v3172_v22  ;;  %v4380_v35 = vsub.f32 %v5887_v14, %v3258_v3 }
 0x17a   :  { %v4978_v48 = vpop.f32.mrf.mxu0 }
 0x17b   :  { %4361 = vst [vmem:[#allocation8 + $0x18] sm:$0xff] %v4358_v4  ;;  %v4357_v26 = vadd.f32 %v4353_v44, %v3252_v46  ;;  %v4379_v17 = vsub.f32 %v5892_v37, %v3252_v46 }
 0x17c   :  { %v3355_v39 = vpop.f32.mrf.mxu0 }
 0x17d   :  { %4360 = vst [vmem:[#allocation8 + $0x10] sm:$0xff] %v4357_v26 }
 0x17e   :  { %v4987_v41 = vpop.f32.mrf.mxu1 }
 0x17f   :  { %v3458_v50 = vadd.f32 %v4987_v41, %v4978_v48 }
 0x180   :  { %v3451_v21 = vpop.f32.mrf.mxu1 }
 0x181   :  { %v4996_v36 = vpop.f32.mrf.mxu0  ;;  %v3452_v24 = vadd.f32 %v3451_v21, %v3355_v39 }
 0x182   :  { %v3543_v52 = vadd.f32 %v4996_v36, %v3458_v50 }
 0x183   :  { %v3535_v27 = vpop.f32.mrf.mxu0 }
 0x184   :  { %v3536_v54 = vadd.f32 %v3535_v27, %v3452_v24 }
 0x186   :  { %v5005_v34 = vpop.f32.mrf.mxu1 }
 0x187   :  { %v3627_v63 = vadd.f32 %v5005_v34, %v3543_v52 }
 0x188   :  { %v3618_v29 = vpop.f32.mrf.mxu1 }
 0x189   :  { %v5014_v0 = vpop.f32.mrf.mxu0  ;;  %v3619_v1 = vadd.f32 %v3618_v29, %v3536_v54 }
 0x18a   :  { %v3713_v5 = vadd.f32 %v5014_v0, %v3627_v63 }
 0x18b   :  { %v3706_v2 = vpop.f32.mrf.mxu0 }
 0x18c   :  { %v3707_v8 = vadd.f32 %v3706_v2, %v3619_v1 }
 0x18e   :  { %v5023_v6 = vpop.f32.mrf.mxu1 }
 0x18f   :  { %v3793_v9 = vadd.f32 %v5023_v6, %v3713_v5 }
 0x190   :  { %v3786_v53 = vpop.f32.mrf.mxu1 }
 0x191   :  { %v4371_v57 = vsub.f32 %v4367_v7, %v3793_v9  ;;  %v3787_v25 = vadd.f32 %v3786_v53, %v3707_v8 }
 0x192   :  { %v5032_v31 = vpop.f32.mrf.mxu0 }
 0x193   :  { %4374 = vst [vmem:[#allocation8 + $0x28] sm:$0xff] %v4371_v57  ;;  %v4370_v55 = vsub.f32 %v4366_v56, %v3787_v25 }
 0x194   :  { %v3889_v60 = vpop.f32.mrf.mxu0 }
 0x195   :  { %4373 = vst [vmem:[#allocation8 + $0x20] sm:$0xff] %v4370_v55 }
 0x196   :  { %v5041_v28 = vpop.f32.mrf.mxu1 }
 0x197   :  { %v3992_v30 = vadd.f32 %v5041_v28, %v5032_v31 }
 0x198   :  { %v3985_v33 = vpop.f32.mrf.mxu1 }
 0x199   :  { %v5050_v58 = vpop.f32.mrf.mxu0  ;;  %v3986_v10 = vadd.f32 %v3985_v33, %v3889_v60 }
 0x19a   :  { %v4077_v49 = vadd.f32 %v5050_v58, %v3992_v30 }
 0x19b   :  { %v4069_v61 = vpop.f32.mrf.mxu0 }
 0x19c   :  { %v4070_v45 = vadd.f32 %v4069_v61, %v3986_v10 }
 0x19e   :  { %v5059_v42 = vpop.f32.mrf.mxu1 }
 0x19f   :  { %v4161_v11 = vadd.f32 %v5059_v42, %v4077_v49 }
 0x1a0   :  { %v4152_v59 = vpop.f32.mrf.mxu1 }
 0x1a1   :  { %v5068_v12 = vpop.f32.mrf.mxu0  ;;  %v4153_v23 = vadd.f32 %v4152_v59, %v4070_v45 }
 0x1a2   :  { %v4247_v13 = vadd.f32 %v5068_v12, %v4161_v11 }
 0x1a3   :  { %v4240_v51 = vpop.f32.mrf.mxu0 }
 0x1a4   :  { %v4241_v15 = vadd.f32 %v4240_v51, %v4153_v23 }
 0x1a5   :  { %v5077_v32 = vpop.f32.mrf.mxu1 }
 0x1a6   :  { %v4327_v47 = vadd.f32 %v5077_v32, %v4247_v13 }
 0x1a7   :  { %v4320_v16 = vpop.f32.mrf.mxu1 }
 0x1a8   :  { %v4384_v38 = vsub.f32 %v4380_v35, %v4327_v47  ;;  %v4321_v62 = vadd.f32 %v4320_v16, %v4241_v15 }
 0x1aa   :  { %4387 = vst [vmem:[#allocation8 + $0x38] sm:$0xff] %v4384_v38  ;;  %v4383_v18 = vsub.f32 %v4379_v17, %v4321_v62 }
 0x1ac   :  { %4386 = vst [vmem:[#allocation8 + $0x30] sm:$0xff] %v4383_v18 }
 0x1ad   :  { %5134 = shalt.err (!%p5131_p0)
}
 0x1ae   :  { %4399 = dma.vmem_to_hbm [thread:$0]  %s4394_s1, 1024, %s5911_s2, [#allocation5], %s5150_s12, %s5150_s12, %s5151_s13  }
 0x1af   :  { %5147 = dma.done.wait [#allocation5], 1024  }
 0x1b0   :  { %5148 = vsyncadd [#allocation5], 4294966272 }
 0x1b1   :  { %4403 = vsyncpa [#allocation4], 1 }
 0x1b2   :  { %4404 = vsyncpa [#allocation7], 1 }
 0x1b3   :  { %4405 = vsyncpa [#allocation5], 1 }

</bundles_post_ra>
